<compile_context>
chip_gen: v7x
topology: tpu7x:2x2x1
jax: 0.10.0
libtpu: 0.0.40
codegen_flags: <defaults>
</compile_context>

<pallas_src>
import functools

import numpy as np
import jax
import jax.numpy as jnp
from jax.experimental import pallas as pl
from jax.experimental.pallas import tpu as pltpu

# ----------------------------- config ---------------------------------------
TAU = 0.1
CNSTS = (1.0, 0.5)
EPSILON = CNSTS[0] / TAU              # 10.0
ALPHA = 0.5
ITER_NUM = 2                          # > 0 -> iterative sigAct1
IN_CHANNELS = 4
OUT_CHANNELS = 8
F_CHANNELS = 3                        # flist images have 3 channels
TIMES = 2
OUTPUT_LEVEL = 1
KERNEL_SIZE_BOUND = 3
MID_CHANNELS = (4, 8)                 # level_max = 2 -> kernel_size_max = 9
KERNEL_SIZE = min((3 ** len(MID_CHANNELS)) // (3 ** OUTPUT_LEVEL),
                  KERNEL_SIZE_BOUND)  # = 3
TAU_EXPLICIT = True
BN_EPS = 1e-5

SCALE = OUT_CHANNELS * TAU            # 0.8
INV_TAU_EPS = 1.0 / (TAU * EPSILON)   # == 1.0 for this config (folded const)


# ------------------------- fused Pallas kernel ------------------------------
def _fused_mgpc_up_kernel(*refs, N, H, W, K, cout, times):
    """Fused MGPCConv_up forward; whole batch stays VMEM/vreg-resident.

    refs = (x0, S, M_0, g_0, b_0, ..., M_{times-1}, g_{times-1}, b_{times-1},
            out, pad_scratch)
      x0  : (N, H+2p, W*cin0)  layer-0 conv input: [interp(x), f, 0-channel]
                               with vertical zero halo, lane-collapsed.
      S   : (W*cout, W*cout)   channel-sum-and-broadcast 0/1 matrix.
      M_i : (K, W*cin_i, W*cout) lane-collapsed conv weights per vertical tap
                               (horizontal taps + padding + tau residual +
                               out_channels*tau prefactor already folded in).
      g_i, b_i : (1, W*cout)   BatchNorm affine params, lane-broadcast.
      out : (N*H, W*cout)      lane-dense output.
      pad_scratch : (N, H+2p, W*cout) vertically padded activation buffer.
    """
    x0_ref, s_ref = refs[0], refs[1]
    layers = refs[2:2 + 3 * times]
    out_ref = refs[2 + 3 * times]
    pad_ref = refs[3 + 3 * times]

    p = K // 2
    NH = N * H
    L = W * cout
    inv_cnt = 1.0 / float(N * H * W)

    def conv(src_ref, m_ref):
        # K plain MXU matmuls; horizontal taps/padding live inside m_ref.
        lin = src_ref.shape[2]
        acc = jnp.zeros((NH, L), jnp.float32)
        for kh in range(K):
            rows = src_ref[:, kh:kh + H, :].reshape(NH, lin)
            acc = acc + jnp.dot(rows, m_ref[kh],
                                preferred_element_type=jnp.float32)
        return acc

    def bn_sigact(y, g_ref, b_ref):
        # One-pass BatchNorm2d training statistics (biased variance); the
        # per-channel reduce + lane broadcast runs on the idle MXU via S.
        S = s_ref[...]
        t1 = jnp.sum(jnp.dot(y, S, preferred_element_type=jnp.float32),
                     axis=0, keepdims=True)                      # (1, L)
        t2 = jnp.sum(jnp.dot(y * y, S, preferred_element_type=jnp.float32),
                     axis=0, keepdims=True)                      # (1, L)
        mean_b = t1 * inv_cnt
        var_b = t2 * inv_cnt - mean_b * mean_b
        scale_b = g_ref[...] * jax.lax.rsqrt(var_b + BN_EPS)
        shift_b = b_ref[...] - mean_b * scale_b
        xh = y * scale_b + shift_b
        # sigAct1: u <- (1-a) u + a * sigmoid(-(u - x)/(tau*epsilon))
        u = jnp.full_like(xh, 0.5)
        for _ in range(ITER_NUM):
            u = (1.0 - ALPHA) * u + ALPHA * jax.nn.sigmoid(
                (xh - u) * INV_TAU_EPS)
        return u

    # ---- layer 0 (input fully prepared lane-dense in the wrapper) ----------
    u = bn_sigact(conv(x0_ref, layers[0]), layers[1], layers[2])

    # ---- layers 1 .. times-1 ------------------------------------------------
    if times > 1:
        # Zero only the halo rows, once; the interior is fully overwritten
        # every iteration and the halo stays zero throughout.
        pad_ref[:, 0:p, :] = jnp.zeros((N, p, L), jnp.float32)
        pad_ref[:, p + H:H + 2 * p, :] = jnp.zeros((N, p, L), jnp.float32)
    for i in range(1, times):
        m_ref, g_ref, b_ref = (layers[3 * i], layers[3 * i + 1],
                               layers[3 * i + 2])
        pad_ref[:, p:p + H, :] = u.reshape(N, H, L)
        u = bn_sigact(conv(pad_ref, m_ref), g_ref, b_ref)

    out_ref[...] = u                   # single contiguous lane-dense store


# --------------------------- wrapper -----------------------------------------
def _nearest_interp_nchw(x, out_h, out_w):
    # PyTorch F.interpolate(mode='nearest'): src = floor(dst * in / out)
    N, C, H, W = x.shape
    ri = (jnp.arange(out_h) * H) // out_h
    ci = (jnp.arange(out_w) * W) // out_w
    return x[:, :, ri[:, None], ci[None, :]]


def _lane_collapsed_weights(w_hwio, cin_pad, width, fold_channels, fold_val):
    """(K,K,cin,cout) HWIO conv weights -> (K, width*cin_pad, width*cout).

    Folds the out_channels*tau prefactor, the tau_explicit center-tap residual
    and the horizontal 'SAME' zero padding into the weight matrices so the
    kernel's conv is just K plain matmuls on lane-collapsed activations.
    """
    K, _, cin, cout = w_hwio.shape
    p = K // 2
    wf = SCALE * w_hwio
    if TAU_EXPLICIT:
        wf = wf.at[p, p, :fold_channels, :].add(fold_val)
    if cin_pad > cin:
        wf = jnp.pad(wf, ((0, 0), (0, 0), (0, cin_pad - cin), (0, 0)))
    # mask[kw, w_in, w_out] = 1 iff w_in == w_out + kw - p  (horizontal tap
    # placement + implicit zero padding at the left/right image borders).
    mask = np.zeros((K, width, width), np.float32)
    for kw in range(K):
        for wo in range(width):
            wi = wo + kw - p
            if 0 <= wi < width:
                mask[kw, wi, wo] = 1.0
    m = jnp.einsum("kio,hkcd->hicod", mask, wf)    # (K, W, cin_pad, W, cout)
    return m.reshape(K, width * cin_pad, width * cout)


def mgpc_conv_up_forward(x_nchw, flist_nchw, params):
    """Forward pass of MGPCConv_up. Inputs/outputs are NCHW (PyTorch layout)."""
    target = flist_nchw[OUTPUT_LEVEL]
    N = x_nchw.shape[0]
    H, W = target.shape[2], target.shape[3]
    p = KERNEL_SIZE // 2
    cin0 = IN_CHANNELS + F_CHANNELS                 # 7
    cin0_pad = ((cin0 + 7) // 8) * 8                # 8 -> W*cin0_pad = 128

    # Layout plumbing stays in the wrapper as cheap XLA ops: nearest upsample,
    # NCHW->NHWC, channel concat + zero-channel pad, lane collapse, vertical
    # zero halo.  Everything downstream runs inside ONE fused Pallas call.
    xi = jnp.transpose(_nearest_interp_nchw(x_nchw, H, W), (0, 2, 3, 1))
    f = jnp.transpose(target, (0, 2, 3, 1))
    x0 = jnp.concatenate(
        [xi, f, jnp.zeros((N, H, W, cin0_pad - cin0), jnp.float32)], axis=-1)
    x0 = jnp.pad(x0.reshape(N, H, W * cin0_pad), ((0, 0), (p, p), (0, 0)))

    # Channel-sum-and-broadcast selection matrix (lane j holds channel j%cout).
    lane_ch = np.arange(W * OUT_CHANNELS) % OUT_CHANNELS
    sel = (lane_ch[:, None] == lane_ch[None, :]).astype(np.float32)

    args = [x0, jnp.asarray(sel)]
    for i in range(TIMES):
        if i == 0:
            m = _lane_collapsed_weights(params["w0"], cin0_pad, W,
                                        IN_CHANNELS, 1.0 / IN_CHANNELS)
        else:
            m = _lane_collapsed_weights(params["w%d" % i], OUT_CHANNELS, W,
                                        OUT_CHANNELS, 1.0 / OUT_CHANNELS)
        args.append(m)
        args.append(jnp.tile(params["gamma%d" % i], W)[None, :])
        args.append(jnp.tile(params["beta%d" % i], W)[None, :])

    kern = functools.partial(_fused_mgpc_up_kernel, N=N, H=H, W=W,
                             K=KERNEL_SIZE, cout=OUT_CHANNELS, times=TIMES)

    y = pl.pallas_call(
        kern,
        out_shape=jax.ShapeDtypeStruct((N * H, W * OUT_CHANNELS), jnp.float32),
        scratch_shapes=[
            pltpu.VMEM((N, H + 2 * p, W * OUT_CHANNELS), jnp.float32),
        ],
    )(*args)

    # Free XLA reshape/transpose back to the PyTorch NCHW layout.
    return jnp.transpose(y.reshape(N, H, W, OUT_CHANNELS), (0, 3, 1, 2))


# ------------------------- pure-JAX reference --------------------------------
def _ref_conv(x_nhwc, w_hwio):
    return jax.lax.conv_general_dilated(
        x_nhwc, w_hwio, window_strides=(1, 1), padding="SAME",
        dimension_numbers=("NHWC", "HWIO", "NHWC"))


def _ref_bn_act(y, gamma, beta):
    mean = jnp.mean(y, axis=(0, 1, 2))
    var = jnp.var(y, axis=(0, 1, 2))
    x = (y - mean) / jnp.sqrt(var + BN_EPS) * gamma + beta
    u = jnp.full_like(x, 0.5)
    for _ in range(ITER_NUM):
        uu = (u - x) / TAU / EPSILON
        uu = jax.nn.sigmoid(-uu)
        u = (1.0 - ALPHA) * u + ALPHA * uu
    return u


def mgpc_conv_up_reference(x_nchw, flist_nchw, params):
    target = flist_nchw[OUTPUT_LEVEL]
    out_interp = _nearest_interp_nchw(x_nchw, target.shape[2], target.shape[3])
    out_i = jnp.transpose(out_interp, (0, 2, 3, 1))
    f = jnp.transpose(target, (0, 2, 3, 1))
    out1 = jnp.concatenate([out_i, f], axis=-1)

    y = SCALE * _ref_conv(out1, params["w0"]) + \
        jnp.sum(out_i, axis=-1, keepdims=True) / IN_CHANNELS
    y = _ref_bn_act(y, params["gamma0"], params["beta0"])
    for i in range(TIMES - 1):
        y = SCALE * _ref_conv(y, params["w%d" % (i + 1)]) + \
            jnp.sum(y, axis=-1, keepdims=True) / OUT_CHANNELS
        y = _ref_bn_act(y, params["gamma%d" % (i + 1)],
                        params["beta%d" % (i + 1)])
    return jnp.transpose(y, (0, 3, 1, 2))


# ------------------------------- main ----------------------------------------
if __name__ == "__main__":
    key = jax.random.PRNGKey(0)
    k_x, k_f0, k_f1, k_w0, k_w1 = jax.random.split(key, 5)

    N = 2
    x = jax.random.normal(k_x, (N, IN_CHANNELS, 8, 8), dtype=jnp.float32)
    flist = [
        jax.random.normal(k_f0, (N, 3, 8, 8), dtype=jnp.float32),    # level 0
        jax.random.normal(k_f1, (N, 3, 16, 16), dtype=jnp.float32),  # level 1
    ]

    # Conv weights in HWIO layout; BN affine params gamma=1, beta=0.
    params = {
        "w0": 0.1 * jax.random.normal(
            k_w0, (KERNEL_SIZE, KERNEL_SIZE, IN_CHANNELS + F_CHANNELS,
                   OUT_CHANNELS), dtype=jnp.float32),
        "gamma0": jnp.ones((OUT_CHANNELS,), jnp.float32),
        "beta0": jnp.zeros((OUT_CHANNELS,), jnp.float32),
        "w1": 0.1 * jax.random.normal(
            k_w1, (KERNEL_SIZE, KERNEL_SIZE, OUT_CHANNELS, OUT_CHANNELS),
            dtype=jnp.float32),
        "gamma1": jnp.ones((OUT_CHANNELS,), jnp.float32),
        "beta1": jnp.zeros((OUT_CHANNELS,), jnp.float32),
    }

    fwd = jax.jit(mgpc_conv_up_forward)
    out = jax.block_until_ready(fwd(x, flist, params))
    ref = jax.block_until_ready(mgpc_conv_up_reference(x, flist, params))

    assert out.shape == (N, OUT_CHANNELS, 16, 16), out.shape
    max_err = float(jnp.max(jnp.abs(out - ref)))
    assert jnp.allclose(out, ref, rtol=1e-4, atol=1e-4), max_err
    print("KERNEL_OK")
</pallas_src>

<mosaic_0001>
module attributes {stable_mosaic.version = 11 : i64} {
  func.func @_fused_mgpc_up_kernel(%arg0: memref<2x18x128xf32, #tpu.memory_space<vmem>>, %arg1: memref<128x128xf32, #tpu.memory_space<vmem>>, %arg2: memref<3x128x128xf32, #tpu.memory_space<vmem>>, %arg3: memref<1x128xf32, #tpu.memory_space<vmem>>, %arg4: memref<1x128xf32, #tpu.memory_space<vmem>>, %arg5: memref<3x128x128xf32, #tpu.memory_space<vmem>>, %arg6: memref<1x128xf32, #tpu.memory_space<vmem>>, %arg7: memref<1x128xf32, #tpu.memory_space<vmem>>, %arg8: memref<32x128xf32, #tpu.memory_space<vmem>>, %arg9: memref<2x18x128xf32, #tpu.memory_space<vmem>>) attributes {dimension_semantics = [], scalar_prefetch = 0 : i64, scratch_operands = 1 : i64, tpu.core_type = #tpu.core_type<tc>} {
    %cst = arith.constant 0.000000e+00 : f32
    %0 = vector.broadcast %cst : f32 to vector<32x128xf32>
    %c0 = arith.constant 0 : index
    %c0_0 = arith.constant 0 : index
    %c0_1 = arith.constant 0 : index
    %1 = vector.load %arg0[%c0, %c0_0, %c0_1] : memref<2x18x128xf32, #tpu.memory_space<vmem>>, vector<2x16x128xf32>
    %2 = vector.shape_cast %1 : vector<2x16x128xf32> to vector<32x128xf32>
    %c0_2 = arith.constant 0 : index
    %c0_3 = arith.constant 0 : index
    %c0_4 = arith.constant 0 : index
    %3 = vector.load %arg2[%c0_2, %c0_3, %c0_4] : memref<3x128x128xf32, #tpu.memory_space<vmem>>, vector<1x128x128xf32>
    %4 = vector.shape_cast %3 : vector<1x128x128xf32> to vector<128x128xf32>
    %cst_5 = arith.constant dense<0.000000e+00> : vector<32x128xf32>
    %5 = tpu.matmul %2, %4, %cst_5 {dimension_numbers = #tpu.dot_dimension_numbers<[1], [0], [0], [1], [0, 0, 1, 1], [], []>} : vector<32x128xf32>, vector<128x128xf32>, vector<32x128xf32> -> vector<32x128xf32>
    %6 = arith.addf %0, %5 : vector<32x128xf32>
    %c0_6 = arith.constant 0 : index
    %c1 = arith.constant 1 : index
    %c0_7 = arith.constant 0 : index
    %7 = vector.load %arg0[%c0_6, %c1, %c0_7] : memref<2x18x128xf32, #tpu.memory_space<vmem>>, vector<2x16x128xf32>
    %8 = vector.shape_cast %7 : vector<2x16x128xf32> to vector<32x128xf32>
    %c1_8 = arith.constant 1 : index
    %c0_9 = arith.constant 0 : index
    %c0_10 = arith.constant 0 : index
    %9 = vector.load %arg2[%c1_8, %c0_9, %c0_10] : memref<3x128x128xf32, #tpu.memory_space<vmem>>, vector<1x128x128xf32>
    %10 = vector.shape_cast %9 : vector<1x128x128xf32> to vector<128x128xf32>
    %cst_11 = arith.constant dense<0.000000e+00> : vector<32x128xf32>
    %11 = tpu.matmul %8, %10, %cst_11 {dimension_numbers = #tpu.dot_dimension_numbers<[1], [0], [0], [1], [0, 0, 1, 1], [], []>} : vector<32x128xf32>, vector<128x128xf32>, vector<32x128xf32> -> vector<32x128xf32>
    %12 = arith.addf %6, %11 : vector<32x128xf32>
    %c0_12 = arith.constant 0 : index
    %c2 = arith.constant 2 : index
    %c0_13 = arith.constant 0 : index
    %13 = vector.load %arg0[%c0_12, %c2, %c0_13] : memref<2x18x128xf32, #tpu.memory_space<vmem>>, vector<2x16x128xf32>
    %14 = vector.shape_cast %13 : vector<2x16x128xf32> to vector<32x128xf32>
    %c2_14 = arith.constant 2 : index
    %c0_15 = arith.constant 0 : index
    %c0_16 = arith.constant 0 : index
    %15 = vector.load %arg2[%c2_14, %c0_15, %c0_16] : memref<3x128x128xf32, #tpu.memory_space<vmem>>, vector<1x128x128xf32>
    %16 = vector.shape_cast %15 : vector<1x128x128xf32> to vector<128x128xf32>
    %cst_17 = arith.constant dense<0.000000e+00> : vector<32x128xf32>
    %17 = tpu.matmul %14, %16, %cst_17 {dimension_numbers = #tpu.dot_dimension_numbers<[1], [0], [0], [1], [0, 0, 1, 1], [], []>} : vector<32x128xf32>, vector<128x128xf32>, vector<32x128xf32> -> vector<32x128xf32>
    %18 = arith.addf %12, %17 : vector<32x128xf32>
    %c0_18 = arith.constant 0 : index
    %c0_19 = arith.constant 0 : index
    %19 = vector.load %arg1[%c0_18, %c0_19] : memref<128x128xf32, #tpu.memory_space<vmem>>, vector<128x128xf32>
    %cst_20 = arith.constant dense<0.000000e+00> : vector<32x128xf32>
    %20 = tpu.matmul %18, %19, %cst_20 {dimension_numbers = #tpu.dot_dimension_numbers<[1], [0], [0], [1], [0, 0, 1, 1], [], []>} : vector<32x128xf32>, vector<128x128xf32>, vector<32x128xf32> -> vector<32x128xf32>
    %cst_21 = arith.constant dense<0.000000e+00> : vector<128xf32>
    %21 = vector.multi_reduction <add>, %20, %cst_21 [0] : vector<32x128xf32> to vector<128xf32>
    %22 = vector.shape_cast %21 : vector<128xf32> to vector<1x128xf32>
    %23 = arith.mulf %18, %18 : vector<32x128xf32>
    %cst_22 = arith.constant dense<0.000000e+00> : vector<32x128xf32>
    %24 = tpu.matmul %23, %19, %cst_22 {dimension_numbers = #tpu.dot_dimension_numbers<[1], [0], [0], [1], [0, 0, 1, 1], [], []>} : vector<32x128xf32>, vector<128x128xf32>, vector<32x128xf32> -> vector<32x128xf32>
    %cst_23 = arith.constant dense<0.000000e+00> : vector<128xf32>
    %25 = vector.multi_reduction <add>, %24, %cst_23 [0] : vector<32x128xf32> to vector<128xf32>
    %26 = vector.shape_cast %25 : vector<128xf32> to vector<1x128xf32>
    %cst_24 = arith.constant 0.001953125 : f32
    %27 = vector.broadcast %cst_24 : f32 to vector<1x128xf32>
    %28 = arith.mulf %22, %27 : vector<1x128xf32>
    %cst_25 = arith.constant 0.001953125 : f32
    %29 = vector.broadcast %cst_25 : f32 to vector<1x128xf32>
    %30 = arith.mulf %26, %29 : vector<1x128xf32>
    %31 = arith.mulf %28, %28 : vector<1x128xf32>
    %32 = arith.subf %30, %31 : vector<1x128xf32>
    %c0_26 = arith.constant 0 : index
    %c0_27 = arith.constant 0 : index
    %33 = vector.load %arg3[%c0_26, %c0_27] : memref<1x128xf32, #tpu.memory_space<vmem>>, vector<1x128xf32>
    %cst_28 = arith.constant 9.99999974E-6 : f32
    %34 = vector.broadcast %cst_28 : f32 to vector<1x128xf32>
    %35 = arith.addf %32, %34 : vector<1x128xf32>
    %36 = math.rsqrt %35 : vector<1x128xf32>
    %37 = arith.mulf %33, %36 : vector<1x128xf32>
    %c0_29 = arith.constant 0 : index
    %c0_30 = arith.constant 0 : index
    %38 = vector.load %arg4[%c0_29, %c0_30] : memref<1x128xf32, #tpu.memory_space<vmem>>, vector<1x128xf32>
    %39 = arith.mulf %28, %37 : vector<1x128xf32>
    %40 = arith.subf %38, %39 : vector<1x128xf32>
    %41 = vector.broadcast %37 : vector<1x128xf32> to vector<32x128xf32>
    %42 = arith.mulf %18, %41 : vector<32x128xf32>
    %43 = vector.broadcast %40 : vector<1x128xf32> to vector<32x128xf32>
    %44 = arith.addf %42, %43 : vector<32x128xf32>
    %cst_31 = arith.constant 5.000000e-01 : f32
    %45 = vector.broadcast %cst_31 : f32 to vector<32x128xf32>
    %cst_32 = arith.constant 5.000000e-01 : f32
    %46 = vector.broadcast %cst_32 : f32 to vector<32x128xf32>
    %47 = arith.mulf %46, %45 : vector<32x128xf32>
    %48 = arith.subf %44, %45 : vector<32x128xf32>
    %cst_33 = arith.constant 1.000000e+00 : f32
    %49 = vector.broadcast %cst_33 : f32 to vector<32x128xf32>
    %50 = arith.mulf %48, %49 : vector<32x128xf32>
    %51 = arith.negf %50 : vector<32x128xf32>
    %52 = math.exp %51 : vector<32x128xf32>
    %cst_34 = arith.constant 1.000000e+00 : f32
    %53 = vector.broadcast %cst_34 : f32 to vector<32x128xf32>
    %54 = arith.addf %53, %52 : vector<32x128xf32>
    %55 = arith.divf %53, %54 : vector<32x128xf32>
    %cst_35 = arith.constant 5.000000e-01 : f32
    %56 = vector.broadcast %cst_35 : f32 to vector<32x128xf32>
    %57 = arith.mulf %56, %55 : vector<32x128xf32>
    %58 = arith.addf %47, %57 : vector<32x128xf32>
    %cst_36 = arith.constant 5.000000e-01 : f32
    %59 = vector.broadcast %cst_36 : f32 to vector<32x128xf32>
    %60 = arith.mulf %59, %58 : vector<32x128xf32>
    %61 = arith.subf %44, %58 : vector<32x128xf32>
    %cst_37 = arith.constant 1.000000e+00 : f32
    %62 = vector.broadcast %cst_37 : f32 to vector<32x128xf32>
    %63 = arith.mulf %61, %62 : vector<32x128xf32>
    %64 = arith.negf %63 : vector<32x128xf32>
    %65 = math.exp %64 : vector<32x128xf32>
    %cst_38 = arith.constant 1.000000e+00 : f32
    %66 = vector.broadcast %cst_38 : f32 to vector<32x128xf32>
    %67 = arith.addf %66, %65 : vector<32x128xf32>
    %68 = arith.divf %66, %67 : vector<32x128xf32>
    %cst_39 = arith.constant 5.000000e-01 : f32
    %69 = vector.broadcast %cst_39 : f32 to vector<32x128xf32>
    %70 = arith.mulf %69, %68 : vector<32x128xf32>
    %71 = arith.addf %60, %70 : vector<32x128xf32>
    %cst_40 = arith.constant 0.000000e+00 : f32
    %72 = vector.broadcast %cst_40 : f32 to vector<2x1x128xf32>
    %c0_41 = arith.constant 0 : index
    %c0_42 = arith.constant 0 : index
    %c0_43 = arith.constant 0 : index
    %73 = vector.load %arg9[%c0_41, %c0_42, %c0_43] : memref<2x18x128xf32, #tpu.memory_space<vmem>>, vector<2x1x128xf32>
    tpu.vector_store %arg9[%c0_41, %c0_42, %c0_43], %72 {strides = array<i32>} : memref<2x18x128xf32, #tpu.memory_space<vmem>>, vector<2x1x128xf32>,
    %cst_44 = arith.constant 0.000000e+00 : f32
    %74 = vector.broadcast %cst_44 : f32 to vector<2x1x128xf32>
    %c0_45 = arith.constant 0 : index
    %c17 = arith.constant 17 : index
    %c0_46 = arith.constant 0 : index
    %75 = vector.load %arg9[%c0_45, %c17, %c0_46] : memref<2x18x128xf32, #tpu.memory_space<vmem>>, vector<2x1x128xf32>
    tpu.vector_store %arg9[%c0_45, %c17, %c0_46], %74 {strides = array<i32>} : memref<2x18x128xf32, #tpu.memory_space<vmem>>, vector<2x1x128xf32>,
    %76 = vector.shape_cast %71 : vector<32x128xf32> to vector<2x16x128xf32>
    %c0_47 = arith.constant 0 : index
    %c1_48 = arith.constant 1 : index
    %c0_49 = arith.constant 0 : index
    %77 = vector.load %arg9[%c0_47, %c1_48, %c0_49] : memref<2x18x128xf32, #tpu.memory_space<vmem>>, vector<2x16x128xf32>
    tpu.vector_store %arg9[%c0_47, %c1_48, %c0_49], %76 {strides = array<i32>} : memref<2x18x128xf32, #tpu.memory_space<vmem>>, vector<2x16x128xf32>,
    %cst_50 = arith.constant 0.000000e+00 : f32
    %78 = vector.broadcast %cst_50 : f32 to vector<32x128xf32>
    %c0_51 = arith.constant 0 : index
    %c0_52 = arith.constant 0 : index
    %c0_53 = arith.constant 0 : index
    %79 = vector.load %arg9[%c0_51, %c0_52, %c0_53] : memref<2x18x128xf32, #tpu.memory_space<vmem>>, vector<2x16x128xf32>
    %80 = vector.shape_cast %79 : vector<2x16x128xf32> to vector<32x128xf32>
    %c0_54 = arith.constant 0 : index
    %c0_55 = arith.constant 0 : index
    %c0_56 = arith.constant 0 : index
    %81 = vector.load %arg5[%c0_54, %c0_55, %c0_56] : memref<3x128x128xf32, #tpu.memory_space<vmem>>, vector<1x128x128xf32>
    %82 = vector.shape_cast %81 : vector<1x128x128xf32> to vector<128x128xf32>
    %cst_57 = arith.constant dense<0.000000e+00> : vector<32x128xf32>
    %83 = tpu.matmul %80, %82, %cst_57 {dimension_numbers = #tpu.dot_dimension_numbers<[1], [0], [0], [1], [0, 0, 1, 1], [], []>} : vector<32x128xf32>, vector<128x128xf32>, vector<32x128xf32> -> vector<32x128xf32>
    %84 = arith.addf %78, %83 : vector<32x128xf32>
    %c0_58 = arith.constant 0 : index
    %c1_59 = arith.constant 1 : index
    %c0_60 = arith.constant 0 : index
    %85 = vector.load %arg9[%c0_58, %c1_59, %c0_60] : memref<2x18x128xf32, #tpu.memory_space<vmem>>, vector<2x16x128xf32>
    %86 = vector.shape_cast %85 : vector<2x16x128xf32> to vector<32x128xf32>
    %c1_61 = arith.constant 1 : index
    %c0_62 = arith.constant 0 : index
    %c0_63 = arith.constant 0 : index
    %87 = vector.load %arg5[%c1_61, %c0_62, %c0_63] : memref<3x128x128xf32, #tpu.memory_space<vmem>>, vector<1x128x128xf32>
    %88 = vector.shape_cast %87 : vector<1x128x128xf32> to vector<128x128xf32>
    %cst_64 = arith.constant dense<0.000000e+00> : vector<32x128xf32>
    %89 = tpu.matmul %86, %88, %cst_64 {dimension_numbers = #tpu.dot_dimension_numbers<[1], [0], [0], [1], [0, 0, 1, 1], [], []>} : vector<32x128xf32>, vector<128x128xf32>, vector<32x128xf32> -> vector<32x128xf32>
    %90 = arith.addf %84, %89 : vector<32x128xf32>
    %c0_65 = arith.constant 0 : index
    %c2_66 = arith.constant 2 : index
    %c0_67 = arith.constant 0 : index
    %91 = vector.load %arg9[%c0_65, %c2_66, %c0_67] : memref<2x18x128xf32, #tpu.memory_space<vmem>>, vector<2x16x128xf32>
    %92 = vector.shape_cast %91 : vector<2x16x128xf32> to vector<32x128xf32>
    %c2_68 = arith.constant 2 : index
    %c0_69 = arith.constant 0 : index
    %c0_70 = arith.constant 0 : index
    %93 = vector.load %arg5[%c2_68, %c0_69, %c0_70] : memref<3x128x128xf32, #tpu.memory_space<vmem>>, vector<1x128x128xf32>
    %94 = vector.shape_cast %93 : vector<1x128x128xf32> to vector<128x128xf32>
    %cst_71 = arith.constant dense<0.000000e+00> : vector<32x128xf32>
    %95 = tpu.matmul %92, %94, %cst_71 {dimension_numbers = #tpu.dot_dimension_numbers<[1], [0], [0], [1], [0, 0, 1, 1], [], []>} : vector<32x128xf32>, vector<128x128xf32>, vector<32x128xf32> -> vector<32x128xf32>
    %96 = arith.addf %90, %95 : vector<32x128xf32>
    %c0_72 = arith.constant 0 : index
    %c0_73 = arith.constant 0 : index
    %97 = vector.load %arg1[%c0_72, %c0_73] : memref<128x128xf32, #tpu.memory_space<vmem>>, vector<128x128xf32>
    %cst_74 = arith.constant dense<0.000000e+00> : vector<32x128xf32>
    %98 = tpu.matmul %96, %97, %cst_74 {dimension_numbers = #tpu.dot_dimension_numbers<[1], [0], [0], [1], [0, 0, 1, 1], [], []>} : vector<32x128xf32>, vector<128x128xf32>, vector<32x128xf32> -> vector<32x128xf32>
    %cst_75 = arith.constant dense<0.000000e+00> : vector<128xf32>
    %99 = vector.multi_reduction <add>, %98, %cst_75 [0] : vector<32x128xf32> to vector<128xf32>
    %100 = vector.shape_cast %99 : vector<128xf32> to vector<1x128xf32>
    %101 = arith.mulf %96, %96 : vector<32x128xf32>
    %cst_76 = arith.constant dense<0.000000e+00> : vector<32x128xf32>
    %102 = tpu.matmul %101, %97, %cst_76 {dimension_numbers = #tpu.dot_dimension_numbers<[1], [0], [0], [1], [0, 0, 1, 1], [], []>} : vector<32x128xf32>, vector<128x128xf32>, vector<32x128xf32> -> vector<32x128xf32>
    %cst_77 = arith.constant dense<0.000000e+00> : vector<128xf32>
    %103 = vector.multi_reduction <add>, %102, %cst_77 [0] : vector<32x128xf32> to vector<128xf32>
    %104 = vector.shape_cast %103 : vector<128xf32> to vector<1x128xf32>
    %cst_78 = arith.constant 0.001953125 : f32
    %105 = vector.broadcast %cst_78 : f32 to vector<1x128xf32>
    %106 = arith.mulf %100, %105 : vector<1x128xf32>
    %cst_79 = arith.constant 0.001953125 : f32
    %107 = vector.broadcast %cst_79 : f32 to vector<1x128xf32>
    %108 = arith.mulf %104, %107 : vector<1x128xf32>
    %109 = arith.mulf %106, %106 : vector<1x128xf32>
    %110 = arith.subf %108, %109 : vector<1x128xf32>
    %c0_80 = arith.constant 0 : index
    %c0_81 = arith.constant 0 : index
    %111 = vector.load %arg6[%c0_80, %c0_81] : memref<1x128xf32, #tpu.memory_space<vmem>>, vector<1x128xf32>
    %cst_82 = arith.constant 9.99999974E-6 : f32
    %112 = vector.broadcast %cst_82 : f32 to vector<1x128xf32>
    %113 = arith.addf %110, %112 : vector<1x128xf32>
    %114 = math.rsqrt %113 : vector<1x128xf32>
    %115 = arith.mulf %111, %114 : vector<1x128xf32>
    %c0_83 = arith.constant 0 : index
    %c0_84 = arith.constant 0 : index
    %116 = vector.load %arg7[%c0_83, %c0_84] : memref<1x128xf32, #tpu.memory_space<vmem>>, vector<1x128xf32>
    %117 = arith.mulf %106, %115 : vector<1x128xf32>
    %118 = arith.subf %116, %117 : vector<1x128xf32>
    %119 = vector.broadcast %115 : vector<1x128xf32> to vector<32x128xf32>
    %120 = arith.mulf %96, %119 : vector<32x128xf32>
    %121 = vector.broadcast %118 : vector<1x128xf32> to vector<32x128xf32>
    %122 = arith.addf %120, %121 : vector<32x128xf32>
    %cst_85 = arith.constant 5.000000e-01 : f32
    %123 = vector.broadcast %cst_85 : f32 to vector<32x128xf32>
    %cst_86 = arith.constant 5.000000e-01 : f32
    %124 = vector.broadcast %cst_86 : f32 to vector<32x128xf32>
    %125 = arith.mulf %124, %123 : vector<32x128xf32>
    %126 = arith.subf %122, %123 : vector<32x128xf32>
    %cst_87 = arith.constant 1.000000e+00 : f32
    %127 = vector.broadcast %cst_87 : f32 to vector<32x128xf32>
    %128 = arith.mulf %126, %127 : vector<32x128xf32>
    %129 = arith.negf %128 : vector<32x128xf32>
    %130 = math.exp %129 : vector<32x128xf32>
    %cst_88 = arith.constant 1.000000e+00 : f32
    %131 = vector.broadcast %cst_88 : f32 to vector<32x128xf32>
    %132 = arith.addf %131, %130 : vector<32x128xf32>
    %133 = arith.divf %131, %132 : vector<32x128xf32>
    %cst_89 = arith.constant 5.000000e-01 : f32
    %134 = vector.broadcast %cst_89 : f32 to vector<32x128xf32>
    %135 = arith.mulf %134, %133 : vector<32x128xf32>
    %136 = arith.addf %125, %135 : vector<32x128xf32>
    %cst_90 = arith.constant 5.000000e-01 : f32
    %137 = vector.broadcast %cst_90 : f32 to vector<32x128xf32>
    %138 = arith.mulf %137, %136 : vector<32x128xf32>
    %139 = arith.subf %122, %136 : vector<32x128xf32>
    %cst_91 = arith.constant 1.000000e+00 : f32
    %140 = vector.broadcast %cst_91 : f32 to vector<32x128xf32>
    %141 = arith.mulf %139, %140 : vector<32x128xf32>
    %142 = arith.negf %141 : vector<32x128xf32>
    %143 = math.exp %142 : vector<32x128xf32>
    %cst_92 = arith.constant 1.000000e+00 : f32
    %144 = vector.broadcast %cst_92 : f32 to vector<32x128xf32>
    %145 = arith.addf %144, %143 : vector<32x128xf32>
    %146 = arith.divf %144, %145 : vector<32x128xf32>
    %cst_93 = arith.constant 5.000000e-01 : f32
    %147 = vector.broadcast %cst_93 : f32 to vector<32x128xf32>
    %148 = arith.mulf %147, %146 : vector<32x128xf32>
    %149 = arith.addf %138, %148 : vector<32x128xf32>
    %c0_94 = arith.constant 0 : index
    %c0_95 = arith.constant 0 : index
    %150 = vector.load %arg8[%c0_94, %c0_95] : memref<32x128xf32, #tpu.memory_space<vmem>>, vector<32x128xf32>
    tpu.vector_store %arg8[%c0_94, %c0_95], %149 {strides = array<i32>} : memref<32x128xf32, #tpu.memory_space<vmem>>, vector<32x128xf32>,
    return
  }
}

</mosaic_0001>

<bundles_post_ra>
// kernel: tile.23
= control target key start
LH: loop header
LB: loop body
LE: loop exit
PB: predicated region body
PF: predicated region fallthrough
CT: control target
= control target key end

     0   :  { %s28_s0 = inlined_call_operand.vmem [shape: f32[8], index: 0, kind: input, shape index: {}]   ;;  %s29_s1 = inlined_call_operand.vmem [shape: f32[16,8], index: 1, kind: output, shape index: {}]  }
   0x1   :  { %v4_v0 = vld [vmem:[%s28_s0] ss:$0 sm:$0xff] }
   0x2   :  { %5 = vst [vmem:[%s29_s1] sm:$0xff] %v4_v0  ;;  %8 = vst [vmem:[%s29_s1 + $0x8] sm:$0xff] %v4_v0 }

// kernel: tile.24
= control target key start
LH: loop header
LB: loop body
LE: loop exit
PB: predicated region body
PF: predicated region fallthrough
CT: control target
= control target key end

     0   :  { %s131_s10 = smov 120   ;;  %s132_s11 = smov 104   ;;  %vm3_vm0 = vcmask 64512   ;;  %vm9_vm1 = vcmask 1048512   ;;  %vm15_vm2 = vcmask 982912   ;;  %vm21_vm3 = vcmask 917312   ;;  %s207_s0 = inlined_call_operand.vmem [shape: f32[16,8], index: 0, kind: input, shape index: {}]   ;;  %s208_s1 = inlined_call_operand.vmem [shape: f32[1,128], index: 1, kind: output, shape index: {}]  }
   0x1   :  { %v101_v0 = vld [vmem:[%s207_s0 + $0xf] sm:$0x1]   ;;  %v103_v1 = vld [vmem:[%s207_s0 + $0xd] sm:$0x1]   ;;  %v102_v2 = vld [vmem:[%s207_s0 + $0xe] sm:$0x1]  }
   0x2   :  { %7 = vrot.lane.b32.xlu0 %v101_v0, %s131_s10  ;;  %19 = vrot.lane.b32.xlu1 %v103_v1, %s132_s11  ;;  %v104_v3 = vld [vmem:[%s207_s0 + $0xc] sm:$0x1]   ;;  %s133_s16 = smov 112   ;;  %s134_s17 = smov 96   ;;  %v105_v4 = vld [vmem:[%s207_s0 + $0xb] sm:$0x1]  }
   0x3   :  { %v106_v5 = vld [vmem:[%s207_s0 + $0xa] sm:$0x1]   ;;  %v2_v6 = vld [vmem:[%s207_s0] sm:$0x1]   ;;  %s135_s24 = smov 88   ;;  %s136_s25 = smov 80  }
   0x4   :  { %4 = vst.msk [vmem:[#allocation0] sm:$0x1] %vm3_vm0, %v2_v6   ;;  %v107_v7 = vld [vmem:[%s207_s0 + $0x9] sm:$0x1]   ;;  %v108_v8 = vld [vmem:[%s207_s0 + $0x8] sm:$0x1]  }
   0x5   :  { %s137_s30 = smov 72   ;;  %s138_s2 = smov 64   ;;  %v109_v9 = vld [vmem:[%s207_s0 + $0x7] sm:$0x1]   ;;  %v110_v10 = vld [vmem:[%s207_s0 + $0x6] sm:$0x1]  }
   0x6   :  { %13 = vrot.lane.b32.xlu0 %v102_v2, %s133_s16  ;;  %25 = vrot.lane.b32.xlu1 %v104_v3, %s134_s17  ;;  %s139_s7 = smov 56   ;;  %s140_s8 = smov 48   ;;  %v111_v11 = vld [vmem:[%s207_s0 + $0x5] sm:$0x1]   ;;  %v112_v12 = vld [vmem:[%s207_s0 + $0x4] sm:$0x1]  }
   0x7   :  { %s141_s13 = smov 40   ;;  %s142_s14 = smov 32   ;;  %v113_v13 = vld [vmem:[%s207_s0 + $0x3] sm:$0x1]   ;;  %v114_v14 = vld [vmem:[%s207_s0 + $0x2] sm:$0x1]  }
   0x8   :  { %s143_s19 = smov 24   ;;  %s144_s20 = smov 16   ;;  %v115_v15 = vld [vmem:[%s207_s0 + $0x1] sm:$0x1]   ;;  %vm27_vm4 = vcmask 851712   ;;  %vm33_vm5 = vcmask 786112  }
   0x9   :  { %s145_s0 = smov 8   ;;  %vm39_vm6 = vcmask 720512   ;;  %vm45_vm7 = vcmask 654912   ;;  %vm51_vm8 = vcmask 589312   ;;  %vm57_vm9 = vcmask 523712  }
   0xa   :  { %31 = vrot.lane.b32.xlu0 %v105_v4, %s135_s24  ;;  %37 = vrot.lane.b32.xlu1 %v106_v5, %s136_s25  ;;  %vm63_vm10 = vcmask 458112   ;;  %vm69_vm11 = vcmask 392512   ;;  %vm75_vm12 = vcmask 326912   ;;  %vm81_vm13 = vcmask 261312  }
   0xb   :  { %vm87_vm14 = vcmask 195712   ;;  %vm93_vm15 = vcmask 130112  }
   0xe   :  { %43 = vrot.lane.b32.xlu0 %v107_v7, %s137_s30  ;;  %49 = vrot.lane.b32.xlu1 %v108_v8, %s138_s2 }
  0x12   :  { %55 = vrot.lane.b32.xlu0 %v109_v9, %s139_s7  ;;  %61 = vrot.lane.b32.xlu1 %v110_v10, %s140_s8 }
  0x16   :  { %67 = vrot.lane.b32.xlu0 %v111_v11, %s141_s13  ;;  %73 = vrot.lane.b32.xlu1 %v112_v12, %s142_s14 }
  0x1a   :  { %79 = vrot.lane.b32.xlu0 %v113_v13, %s143_s19  ;;  %85 = vrot.lane.b32.xlu1 %v114_v14, %s144_s20 }
  0x1e   :  { %91 = vrot.lane.b32.xlu0 %v115_v15, %s145_s0 }
  0x74   :  { %v8_v16 = vpop.permute.xlu0 %7   ;;  %v20_v17 = vpop.permute.xlu1 %19  }
  0x75   :  { %10 = vst.msk [vmem:[#allocation0] sm:$0x1] %vm9_vm1, %v8_v16  }
  0x78   :  { %v14_v18 = vpop.permute.xlu0 %13   ;;  %v26_v19 = vpop.permute.xlu1 %25  }
  0x79   :  { %16 = vst.msk [vmem:[#allocation0] sm:$0x1] %vm15_vm2, %v14_v18  }
  0x7a   :  { %22 = vst.msk [vmem:[#allocation0] sm:$0x1] %vm21_vm3, %v20_v17  }
  0x7b   :  { %28 = vst.msk [vmem:[#allocation0] sm:$0x1] %vm27_vm4, %v26_v19  }
  0x7c   :  { %v32_v20 = vpop.permute.xlu0 %31   ;;  %v38_v21 = vpop.permute.xlu1 %37  }
  0x7d   :  { %34 = vst.msk [vmem:[#allocation0] sm:$0x1] %vm33_vm5, %v32_v20  }
  0x7e   :  { %40 = vst.msk [vmem:[#allocation0] sm:$0x1] %vm39_vm6, %v38_v21  }
  0x80   :  { %v44_v22 = vpop.permute.xlu0 %43   ;;  %v50_v23 = vpop.permute.xlu1 %49  }
  0x81   :  { %46 = vst.msk [vmem:[#allocation0] sm:$0x1] %vm45_vm7, %v44_v22  }
  0x82   :  { %52 = vst.msk [vmem:[#allocation0] sm:$0x1] %vm51_vm8, %v50_v23  }
  0x84   :  { %v56_v24 = vpop.permute.xlu0 %55   ;;  %v62_v25 = vpop.permute.xlu1 %61  }
  0x85   :  { %58 = vst.msk [vmem:[#allocation0] sm:$0x1] %vm57_vm9, %v56_v24  }
  0x86   :  { %64 = vst.msk [vmem:[#allocation0] sm:$0x1] %vm63_vm10, %v62_v25  }
  0x88   :  { %v68_v26 = vpop.permute.xlu0 %67   ;;  %v74_v27 = vpop.permute.xlu1 %73  }
  0x89   :  { %70 = vst.msk [vmem:[#allocation0] sm:$0x1] %vm69_vm11, %v68_v26  }
  0x8a   :  { %76 = vst.msk [vmem:[#allocation0] sm:$0x1] %vm75_vm12, %v74_v27  }
  0x8c   :  { %v80_v28 = vpop.permute.xlu0 %79   ;;  %v86_v29 = vpop.permute.xlu1 %85  }
  0x8d   :  { %82 = vst.msk [vmem:[#allocation0] sm:$0x1] %vm81_vm13, %v80_v28  }
  0x8e   :  { %88 = vst.msk [vmem:[#allocation0] sm:$0x1] %vm87_vm14, %v86_v29  }
  0x90   :  { %v92_v30 = vpop.permute.xlu0 %91  }
  0x91   :  { %94 = vst.msk [vmem:[#allocation0] sm:$0x1] %vm93_vm15, %v92_v30  }
  0x98   :  { %v98_v31 = vld [vmem:[#allocation0] sm:$0x1] }
  0x99   :  { %100 = vst [vmem:[%s208_s1] sm:$0x1] %v98_v31 }

// kernel: mgpc_conv_up_forward.1
= control target key start
LH: loop header
LB: loop body
LE: loop exit
PB: predicated region body
PF: predicated region fallthrough
CT: control target
= control target key end

     0   :  { %s2970_s2 = inlined_call_operand.vmem [shape: f32[3,128,128], index: 2, kind: input, shape index: {}]   ;;  %s2971_s0 = inlined_call_operand.vmem [shape: f32[2,18,128], index: 0, kind: input, shape index: {}]   ;;  %s2972_s1 = inlined_call_operand.vmem [shape: f32[128,128], index: 1, kind: input, shape index: {}]   ;;  %s2973_s5 = inlined_call_operand.vmem [shape: f32[3,128,128], index: 5, kind: input, shape index: {}]   ;;  %s2974_s3 = inlined_call_operand.vmem [shape: f32[1,128], index: 3, kind: input, shape index: {}]   ;;  %s2975_s4 = inlined_call_operand.vmem [shape: f32[1,128], index: 4, kind: input, shape index: {}]   ;;  %s2976_s6 = inlined_call_operand.vmem [shape: f32[1,128], index: 6, kind: input, shape index: {}]   ;;  %s2977_s7 = inlined_call_operand.vmem [shape: f32[1,128], index: 7, kind: input, shape index: {}]   ;;  %s2978_s8 = inlined_call_operand.vmem [shape: f32[32,128], index: 8, kind: output, shape index: {}]  }
   0x1   :  { %v1317_v0 = vld [vmem:[%s2970_s2 + $0x80] sm:$0xff]  ;;  %v1318_v1 = vld [vmem:[%s2970_s2 + $0x88] sm:$0xff]  ;;  %v1319_v2 = vld [vmem:[%s2970_s2 + $0x90] sm:$0xff] }
   0x2   :  { %v1985_v3 = vpack.c.bf16 %v1318_v1, %v1317_v0  ;;  %v1320_v4 = vld [vmem:[%s2970_s2 + $0x98] sm:$0xff]  ;;  %v1321_v6 = vld [vmem:[%s2970_s2 + $0xa0] sm:$0xff]  ;;  %v1322_v7 = vld [vmem:[%s2970_s2 + $0xa8] sm:$0xff] }
   0x3   :  { %v1989_v5 = vpack.c.bf16 %v1320_v4, %v1319_v2  ;;  %v1993_v8 = vpack.c.bf16 %v1322_v7, %v1321_v6  ;;  %v49_v9 = vld [vmem:[%s2971_s0 + $0x1] sm:$0xff]  ;;  %v1323_v10 = vld [vmem:[%s2970_s2 + $0xb0] sm:$0xff]  ;;  %v1324_v11 = vld [vmem:[%s2970_s2 + $0xb8] sm:$0xff] }
   0x4   :  { %1986 = vmatprep.subr.bf16.mxu0 %v1985_v3  ;;  %1637 = vmatprep.mubr.f32.mxu0 %v49_v9  ;;  %v1997_v12 = vpack.c.bf16 %v1324_v11, %v1323_v10  ;;  %v1325_v13 = vld [vmem:[%s2970_s2 + $0xc0] sm:$0xff]  ;;  %v1326_v14 = vld [vmem:[%s2970_s2 + $0xc8] sm:$0xff]  ;;  %v1327_v16 = vld [vmem:[%s2970_s2 + $0xd0] sm:$0xff] }
   0x5   :  { %1988 = vmatpush3.bf16.msra.mxu0 %v1985_v3  ;;  %v2001_v15 = vpack.c.bf16 %v1326_v14, %v1325_v13  ;;  %v1328_v17 = vld [vmem:[%s2970_s2 + $0xd8] sm:$0xff]  ;;  %v1329_v19 = vld [vmem:[%s2970_s2 + $0xe0] sm:$0xff]  ;;  %v1330_v20 = vld [vmem:[%s2970_s2 + $0xe8] sm:$0xff] }
   0x6   :  { %1990 = vmatprep.subr.bf16.mxu0 %v1989_v5  ;;  %v2005_v18 = vpack.c.bf16 %v1328_v17, %v1327_v16  ;;  %v350_v21 = vld [vmem:[%s2972_s1] sm:$0xff]  ;;  %v351_v22 = vld [vmem:[%s2972_s1 + $0x8] sm:$0xff]  ;;  %v352_v23 = vld [vmem:[%s2972_s1 + $0x10] sm:$0xff]  ;;  %v2009_v24 = vpack.c.bf16 %v1330_v20, %v1329_v19 }
   0x7   :  { %v1331_v25 = vld [vmem:[%s2970_s2 + $0xf0] sm:$0xff]  ;;  %v2493_v26 = vpack.c.bf16 %v351_v22, %v350_v21  ;;  %v353_v27 = vld [vmem:[%s2972_s1 + $0x18] sm:$0xff]  ;;  %v354_v30 = vld [vmem:[%s2972_s1 + $0x20] sm:$0xff] }
   0x8   :  { %v1332_v28 = vld [vmem:[%s2970_s2 + $0xf8] sm:$0xff]  ;;  %v2501_v29 = vpack.c.bf16 %v353_v27, %v352_v23  ;;  %v355_v31 = vld [vmem:[%s2972_s1 + $0x28] sm:$0xff]  ;;  %v33_v33 = vld [vmem:[%s2970_s2] sm:$0xff] }
   0x9   :  { %1992 = vmatpush3.bf16.msra.mxu0 %v1989_v5  ;;  %2082 = vmatprep.subr.bf16.mxu1 %v2493_v26  ;;  %v2013_v32 = vpack.c.bf16 %v1332_v28, %v1331_v25  ;;  %v2515_v34 = vpack.c.bf16 %v355_v31, %v354_v30  ;;  %v34_v35 = vld [vmem:[%s2970_s2 + $0x8] sm:$0xff]  ;;  %v356_v36 = vld [vmem:[%s2972_s1 + $0x30] sm:$0xff]  ;;  %v357_v37 = vld [vmem:[%s2972_s1 + $0x38] sm:$0xff] }
   0xa   :  { %1994 = vmatprep.subr.bf16.mxu0 %v1993_v8  ;;  %2084 = vmatpush3.bf16.msra.mxu1 %v2493_v26  ;;  %v2017_v38 = vpack.c.bf16 %v34_v35, %v33_v33  ;;  %v2528_v39 = vpack.c.bf16 %v357_v37, %v356_v36  ;;  %v35_v40 = vld [vmem:[%s2970_s2 + $0x10] sm:$0xff]  ;;  %v36_v41 = vld [vmem:[%s2970_s2 + $0x18] sm:$0xff]  ;;  %v358_v42 = vld [vmem:[%s2972_s1 + $0x40] sm:$0xff] }
   0xb   :  { %2086 = vmatprep.subr.bf16.mxu1 %v2501_v29  ;;  %v359_v43 = vld [vmem:[%s2972_s1 + $0x48] sm:$0xff]  ;;  %v2021_v45 = vpack.c.bf16 %v36_v41, %v35_v40  ;;  %v51_v46 = vld [vmem:[%s2971_s0 + $0x19] sm:$0xff]  ;;  %v360_v50 = vld [vmem:[%s2972_s1 + $0x50] sm:$0xff] }
   0xc   :  { %v50_v44 = vld [vmem:[%s2971_s0 + $0x9] sm:$0xff]  ;;  %v37_v47 = vld [vmem:[%s2970_s2 + $0x20] sm:$0xff]  ;;  %v2556_v49 = vpack.c.bf16 %v359_v43, %v358_v42  ;;  %v361_v51 = vld [vmem:[%s2972_s1 + $0x58] sm:$0xff] }
   0xd   :  { %1996 = vmatpush3.bf16.msra.mxu0 %v1993_v8  ;;  %v38_v48 = vld [vmem:[%s2970_s2 + $0x28] sm:$0xff]  ;;  %v29_v54 = vld [vmem:[%s2971_s0] sm:$0xff]  ;;  %v39_v55 = vld [vmem:[%s2970_s2 + $0x30] sm:$0xff]  ;;  %v2578_v57 = vpack.c.bf16 %v361_v51, %v360_v50 }
   0xe   :  { %1998 = vmatprep.subr.bf16.mxu0 %v1997_v12  ;;  %2088 = vmatpush3.bf16.msra.mxu1 %v2501_v29  ;;  %v52_v52 = vld [vmem:[%s2971_s0 + $0x21] sm:$0xff]  ;;  %v2025_v53 = vpack.c.bf16 %v38_v48, %v37_v47  ;;  %v40_v56 = vld [vmem:[%s2970_s2 + $0x38] sm:$0xff]  ;;  %v364_v0 = vld [vmem:[%s2972_s1 + $0x70] sm:$0xff] }
   0xf   :  { %2090 = vmatprep.subr.bf16.mxu1 %v2515_v34  ;;  %v362_v58 = vld [vmem:[%s2972_s1 + $0x60] sm:$0xff]  ;;  %v363_v59 = vld [vmem:[%s2972_s1 + $0x68] sm:$0xff]  ;;  %v2029_v60 = vpack.c.bf16 %v40_v56, %v39_v55  ;;  %v365_v1 = vld [vmem:[%s2972_s1 + $0x78] sm:$0xff] }
  0x10   :  { %v41_v61 = vld [vmem:[%s2970_s2 + $0x40] sm:$0xff]  ;;  %v42_v62 = vld [vmem:[%s2970_s2 + $0x48] sm:$0xff]  ;;  %v2594_v63 = vpack.c.bf16 %v363_v59, %v362_v58  ;;  %v43_v3 = vld [vmem:[%s2970_s2 + $0x50] sm:$0xff]  ;;  %v2610_v5 = vpack.c.bf16 %v365_v1, %v364_v0 }
  0x11   :  { %2000 = vmatpush3.bf16.msra.mxu0 %v1997_v12  ;;  %v2033_v2 = vpack.c.bf16 %v42_v62, %v41_v61  ;;  %v44_v4 = vld [vmem:[%s2970_s2 + $0x58] sm:$0xff]  ;;  %v45_v7 = vld [vmem:[%s2970_s2 + $0x60] sm:$0xff]  ;;  %v46_v8 = vld [vmem:[%s2970_s2 + $0x68] sm:$0xff] }
  0x12   :  { %2002 = vmatprep.subr.bf16.mxu0 %v2001_v15  ;;  %2092 = vmatpush3.bf16.msra.mxu1 %v2515_v34  ;;  %v2037_v6 = vpack.c.bf16 %v44_v4, %v43_v3  ;;  %v2041_v9 = vpack.c.bf16 %v46_v8, %v45_v7  ;;  %v47_v10 = vld [vmem:[%s2970_s2 + $0x70] sm:$0xff]  ;;  %v48_v11 = vld [vmem:[%s2970_s2 + $0x78] sm:$0xff]  ;;  %v1333_v13 = vld [vmem:[%s2970_s2 + $0x100] sm:$0xff] }
  0x13   :  { %2094 = vmatprep.subr.bf16.mxu1 %v2528_v39  ;;  %v2045_v12 = vpack.c.bf16 %v48_v11, %v47_v10  ;;  %v1334_v14 = vld [vmem:[%s2970_s2 + $0x108] sm:$0xff]  ;;  %v1335_v16 = vld [vmem:[%s2970_s2 + $0x110] sm:$0xff]  ;;  %v1336_v17 = vld [vmem:[%s2970_s2 + $0x118] sm:$0xff] }
  0x14   :  { %v2053_v19 = vpack.c.bf16 %v1336_v17, %v1335_v16  ;;  %v31_v20 = vld [vmem:[%s2971_s0 + $0x18] sm:$0xff]  ;;  %v1337_v21 = vld [vmem:[%s2970_s2 + $0x120] sm:$0xff]  ;;  %v1338_v22 = vld [vmem:[%s2970_s2 + $0x128] sm:$0xff] }
  0x15   :  { %2004 = vmatpush3.bf16.msra.mxu0 %v2001_v15  ;;  %v2049_v15 = vpack.c.bf16 %v1334_v14, %v1333_v13  ;;  %v32_v23 = vld [vmem:[%s2971_s0 + $0x20] sm:$0xff]  ;;  %v1339_v27 = vld [vmem:[%s2970_s2 + $0x130] sm:$0xff]  ;;  %v1340_v28 = vld [vmem:[%s2970_s2 + $0x138] sm:$0xff] }
  0x16   :  { %2006 = vmatprep.subr.bf16.mxu0 %v2005_v18  ;;  %2096 = vmatpush3.bf16.msra.mxu1 %v2528_v39  ;;  %v240_v25 = vld [vmem:[%s2971_s0 + $0x2] sm:$0xff]  ;;  %v2061_v30 = vpack.c.bf16 %v1340_v28, %v1339_v27  ;;  %v1343_v35 = vld [vmem:[%s2970_s2 + $0x150] sm:$0xff]  ;;  %v1344_v36 = vld [vmem:[%s2970_s2 + $0x158] sm:$0xff] }
  0x17   :  { %2098 = vmatprep.subr.bf16.mxu1 %v2556_v49  ;;  %v1341_v31 = vld [vmem:[%s2970_s2 + $0x140] sm:$0xff]  ;;  %v2069_v37 = vpack.c.bf16 %v1344_v36, %v1343_v35  ;;  %v1346_v40 = vld [vmem:[%s2970_s2 + $0x168] sm:$0xff]  ;;  %v1347_v42 = vld [vmem:[%s2970_s2 + $0x170] sm:$0xff] }
  0x18   :  { %v1348_v43 = vld [vmem:[%s2970_s2 + $0x178] sm:$0xff]  ;;  %v243_v47 = vld [vmem:[%s2971_s0 + $0x22] sm:$0xff]  ;;  %v1363_v61 = vld [vmem:[%s2973_s5 + $0x90] sm:$0xff] }
  0x19   :  { %2008 = vmatpush3.bf16.msra.mxu0 %v2005_v18  ;;  %v30_v18 = vld [vmem:[%s2971_s0 + $0x8] sm:$0xff]  ;;  %v1361_v58 = vld [vmem:[%s2973_s5 + $0x80] sm:$0xff]  ;;  %v1364_v62 = vld [vmem:[%s2973_s5 + $0x98] sm:$0xff] }
  0x1a   :  { %2010 = vmatprep.subr.bf16.mxu0 %v2009_v24  ;;  %2100 = vmatpush3.bf16.msra.mxu1 %v2556_v49  ;;  %v1362_v59 = vld [vmem:[%s2973_s5 + $0x88] sm:$0xff]  ;;  %v2149_v0 = vpack.c.bf16 %v1364_v62, %v1363_v61  ;;  %v1365_v1 = vld [vmem:[%s2973_s5 + $0xa0] sm:$0xff]  ;;  %v1367_v4 = vld [vmem:[%s2973_s5 + $0xb0] sm:$0xff] }
  0x1b   :  { %2102 = vmatprep.subr.bf16.mxu1 %v2578_v57  ;;  %v1369_v10 = vld [vmem:[%s2973_s5 + $0xc0] sm:$0xff]  ;;  %v1370_v11 = vld [vmem:[%s2973_s5 + $0xc8] sm:$0xff]  ;;  %v1371_v14 = vld [vmem:[%s2973_s5 + $0xd0] sm:$0xff] }
  0x1c   :  { %v2161_v13 = vpack.c.bf16 %v1370_v11, %v1369_v10  ;;  %v1373_v16 = vld [vmem:[%s2973_s5 + $0xe0] sm:$0xff] }
  0x1d   :  { %2012 = vmatpush3.bf16.msra.mxu0 %v2009_v24  ;;  %v2057_v24 = vpack.c.bf16 %v1338_v22, %v1337_v21  ;;  %v677_v28 = vld [vmem:[%s2973_s5] sm:$0xff] }
  0x1e   :  { %2014 = vmatprep.subr.bf16.mxu0 %v2013_v32  ;;  %2104 = vmatpush3.bf16.msra.mxu1 %v2578_v57 }
  0x1f   :  { %2106 = vmatprep.subr.bf16.mxu1 %v2594_v63 }
  0x21   :  { %2016 = vmatpush3.bf16.msra.mxu0 %v2013_v32  ;;  %v1342_v32 = vld [vmem:[%s2970_s2 + $0x148] sm:$0xff] }
  0x22   :  { %2018 = vmatprep.subr.bf16.mxu0 %v2017_v38  ;;  %2108 = vmatpush3.bf16.msra.mxu1 %v2594_v63  ;;  %v2065_v33 = vpack.c.bf16 %v1342_v32, %v1341_v31  ;;  %v2390_v32 = vmov 0.0  }
  0x23   :  { %2110 = vmatprep.subr.bf16.mxu1 %v2610_v5  ;;  %665 = vst [vmem:[#allocation2] sm:$0x1] %v2390_v32  ;;  %666 = vst [vmem:[#allocation2 + $0x18] sm:$0x1] %v2390_v32 }
  0x24   :  { %1638 = vmatmul.mubr.f32.vlgmr.msra.gmra.mrb[0].mxu0 %v50_v44  ;;  %v2077_v44 = vpack.c.bf16 %v1348_v43, %v1347_v42  ;;  %667 = vst [vmem:[#allocation2 + $0x11] sm:$0x1] %v2390_v32  ;;  %668 = vst [vmem:[#allocation2 + $0x29] sm:$0x1] %v2390_v32 }
  0x25   :  { %2020 = vmatpush3.bf16.msra.mxu0 %v2017_v38  ;;  %1640 = vmatprep.mubr.f32.mxu0 %v51_v46  ;;  %v1345_v38 = vld [vmem:[%s2970_s2 + $0x160] sm:$0xff] }
  0x26   :  { %2022 = vmatprep.subr.bf16.mxu0 %v2021_v45  ;;  %2112 = vmatpush3.bf16.msra.mxu1 %v2610_v5  ;;  %v2073_v41 = vpack.c.bf16 %v1346_v40, %v1345_v38  ;;  %v242_v46 = vld [vmem:[%s2971_s0 + $0x1a] sm:$0xff] }
  0x27   :  { %2114 = vmatprep.subr.bf16.mxu1 %v2493_v26 }
  0x28   :  { %1641 = vmatmul.mubr.f32.gmra.mrb[2].mxu0 %v52_v52 }
  0x29   :  { %2024 = vmatpush3.bf16.msra.mxu0 %v2021_v45  ;;  %1675 = vmatprep.mubr.f32.mxu0 %v29_v54  ;;  %v241_v45 = vld [vmem:[%s2971_s0 + $0xa] sm:$0xff] }
  0x2a   :  { %2026 = vmatprep.subr.bf16.mxu0 %v2025_v53 }
  0x2d   :  { %2028 = vmatpush3.bf16.msra.mxu0 %v2025_v53 }
  0x2e   :  { %2030 = vmatprep.subr.bf16.mxu0 %v2029_v60 }
  0x31   :  { %2032 = vmatpush3.bf16.msra.mxu0 %v2029_v60  ;;  %v2145_v60 = vpack.c.bf16 %v1362_v59, %v1361_v58 }
  0x32   :  { %2034 = vmatprep.subr.bf16.mxu0 %v2033_v2 }
  0x35   :  { %2036 = vmatpush3.bf16.msra.mxu0 %v2033_v2  ;;  %v1366_v2 = vld [vmem:[%s2973_s5 + $0xa8] sm:$0xff] }
  0x36   :  { %2038 = vmatprep.subr.bf16.mxu0 %v2037_v6  ;;  %v2153_v3 = vpack.c.bf16 %v1366_v2, %v1365_v1  ;;  %v570_v2 = vlaneseq }
  0x39   :  { %2040 = vmatpush3.bf16.msra.mxu0 %v2037_v6  ;;  %v1368_v6 = vld [vmem:[%s2973_s5 + $0xb8] sm:$0xff] }
  0x3a   :  { %2042 = vmatprep.subr.bf16.mxu0 %v2041_v9  ;;  %v2157_v7 = vpack.c.bf16 %v1368_v6, %v1367_v4  ;;  %v562_v4 = vld [vmem:[%s2974_s3] sm:$0x1] }
  0x3d   :  { %2044 = vmatpush3.bf16.msra.mxu0 %v2041_v9 }
  0x3e   :  { %2046 = vmatprep.subr.bf16.mxu0 %v2045_v12 }
  0x41   :  { %2048 = vmatpush3.bf16.msra.mxu0 %v2045_v12 }
  0x42   :  { %2050 = vmatprep.subr.bf16.mxu0 %v2049_v15 }
  0x44   :  { %1676 = vmatmul.mubr.f32.vlgmr.msra.gmra.mrb[0].mxu0 %v30_v18 }
  0x45   :  { %2052 = vmatpush3.bf16.msra.mxu0 %v2049_v15  ;;  %1678 = vmatprep.mubr.f32.mxu0 %v31_v20  ;;  %v1372_v15 = vld [vmem:[%s2973_s5 + $0xd8] sm:$0xff] }
  0x46   :  { %2054 = vmatprep.subr.bf16.mxu0 %v2053_v19  ;;  %v2165_v18 = vpack.c.bf16 %v1372_v15, %v1371_v14 }
  0x48   :  { %1679 = vmatmul.mubr.f32.gmra.mrb[2].mxu0 %v32_v23  ;;  %v1375_v23 = vld [vmem:[%s2973_s5 + $0xf0] sm:$0xff] }
  0x49   :  { %2056 = vmatpush3.bf16.msra.mxu0 %v2053_v19  ;;  %1713 = vmatprep.mubr.f32.mxu0 %v240_v25  ;;  %v1374_v19 = vld [vmem:[%s2973_s5 + $0xe8] sm:$0xff] }
  0x4a   :  { %2058 = vmatprep.subr.bf16.mxu0 %v2057_v24  ;;  %v2169_v22 = vpack.c.bf16 %v1374_v19, %v1373_v16 }
  0x4d   :  { %2060 = vmatpush3.bf16.msra.mxu0 %v2057_v24  ;;  %v1376_v24 = vld [vmem:[%s2973_s5 + $0xf8] sm:$0xff] }
  0x4e   :  { %2062 = vmatprep.subr.bf16.mxu0 %v2061_v30  ;;  %v2173_v27 = vpack.c.bf16 %v1376_v24, %v1375_v23 }
  0x51   :  { %2064 = vmatpush3.bf16.msra.mxu0 %v2061_v30  ;;  %v678_v30 = vld [vmem:[%s2973_s5 + $0x8] sm:$0xff] }
  0x52   :  { %2066 = vmatprep.subr.bf16.mxu0 %v2065_v33  ;;  %v2803_v31 = vpack.c.bf16 %v678_v30, %v677_v28 }
  0x55   :  { %2068 = vmatpush3.bf16.msra.mxu0 %v2065_v33 }
  0x56   :  { %2070 = vmatprep.subr.bf16.mxu0 %v2069_v37 }
  0x59   :  { %2072 = vmatpush3.bf16.msra.mxu0 %v2069_v37 }
  0x5a   :  { %2074 = vmatprep.subr.bf16.mxu0 %v2073_v41 }
  0x5d   :  { %2076 = vmatpush3.bf16.msra.mxu0 %v2073_v41 }
  0x5e   :  { %2078 = vmatprep.subr.bf16.mxu0 %v2077_v44 }
  0x61   :  { %2080 = vmatpush3.bf16.msra.mxu0 %v2077_v44 }
  0x62   :  { %2242 = vmatprep.subr.bf16.mxu0 %v2493_v26 }
  0x64   :  { %1714 = vmatmul.mubr.f32.vlgmr.msra.gmra.mrb[0].mxu0 %v241_v45 }
  0x65   :  { %1716 = vmatprep.mubr.f32.mxu0 %v242_v46  ;;  %2244 = vmatpush3.bf16.msra.mxu0 %v2493_v26 }
  0x66   :  { %2246 = vmatprep.subr.bf16.mxu0 %v2501_v29 }
  0x68   :  { %1717 = vmatmul.mubr.f32.gmra.mrb[2].mxu0 %v243_v47 }
  0x69   :  { %2248 = vmatpush3.bf16.msra.mxu0 %v2501_v29 }
  0x6a   :  { %2250 = vmatprep.subr.bf16.mxu0 %v2515_v34 }
  0x6d   :  { %2252 = vmatpush3.bf16.msra.mxu0 %v2515_v34 }
  0x6e   :  { %2254 = vmatprep.subr.bf16.mxu0 %v2528_v39 }
  0x71   :  { %2256 = vmatpush3.bf16.msra.mxu0 %v2528_v39 }
  0x72   :  { %2258 = vmatprep.subr.bf16.mxu0 %v2556_v49 }
  0x75   :  { %2260 = vmatpush3.bf16.msra.mxu0 %v2556_v49 }
  0x76   :  { %2262 = vmatprep.subr.bf16.mxu0 %v2578_v57 }
  0x79   :  { %2264 = vmatpush3.bf16.msra.mxu0 %v2578_v57 }
  0x7a   :  { %2266 = vmatprep.subr.bf16.mxu0 %v2594_v63 }
  0x7d   :  { %2268 = vmatpush3.bf16.msra.mxu0 %v2594_v63 }
  0x7e   :  { %2270 = vmatprep.subr.bf16.mxu0 %v2610_v5 }
  0x81   :  { %2272 = vmatpush3.bf16.msra.mxu0 %v2610_v5 }
  0x82   :  { %2274 = vmatprep.subr.bf16.mxu0 %v2493_v26 }
 0x137   :  { %v2714_v48 = vpop.f32.mrb[0].mxu0 }
 0x138   :  { %v2716_v50 = vpop.f32.mrb[1].mxu0  ;;  %v461_v54 = vmul.f32 %v2714_v48, %v2714_v48 }
 0x139   :  { %1751 = vmatprep.mubr.f32.mxu1 %v2716_v50  ;;  %v460_v53 = vmul.f32 %v2716_v50, %v2716_v50 }
 0x13a   :  { %1752 = vmatmul.mubr.f32.vlgmr.msra.gmra.mrb[0].mxu1 %v2714_v48 }
 0x13b   :  { %2116 = vmatpush3.bf16.msra.mxu1 %v2493_v26  ;;  %v2721_v51 = vpop.f32.mrb[2].mxu0 }
 0x13c   :  { %v2723_v52 = vpop.f32.mrb[3].mxu0  ;;  %2118 = vmatprep.subr.bf16.mxu1 %v2501_v29  ;;  %v463_v56 = vmul.f32 %v2721_v51, %v2721_v51 }
 0x13d   :  { %1754 = vmatprep.mubr.f32.mxu1 %v2723_v52  ;;  %v462_v55 = vmul.f32 %v2723_v52, %v2723_v52 }
 0x13e   :  { %1755 = vmatmul.mubr.f32.gmra.mrb[2].mxu1 %v2721_v51 }
 0x13f   :  { %2120 = vmatpush3.bf16.msra.mxu1 %v2501_v29  ;;  %1789 = vmatprep.mubr.f32.mxu1 %v460_v53 }
 0x140   :  { %2122 = vmatprep.subr.bf16.mxu1 %v2515_v34 }
 0x143   :  { %2124 = vmatpush3.bf16.msra.mxu1 %v2515_v34 }
 0x144   :  { %2126 = vmatprep.subr.bf16.mxu1 %v2528_v39 }
 0x147   :  { %2128 = vmatpush3.bf16.msra.mxu1 %v2528_v39 }
 0x148   :  { %2130 = vmatprep.subr.bf16.mxu1 %v2556_v49 }
 0x14b   :  { %2132 = vmatpush3.bf16.msra.mxu1 %v2556_v49 }
 0x14c   :  { %2134 = vmatprep.subr.bf16.mxu1 %v2578_v57 }
 0x14f   :  { %2136 = vmatpush3.bf16.msra.mxu1 %v2578_v57 }
 0x150   :  { %2138 = vmatprep.subr.bf16.mxu1 %v2594_v63 }
 0x153   :  { %2140 = vmatpush3.bf16.msra.mxu1 %v2594_v63 }
 0x154   :  { %2142 = vmatprep.subr.bf16.mxu1 %v2610_v5 }
 0x157   :  { %2144 = vmatpush3.bf16.msra.mxu1 %v2610_v5 }
 0x158   :  { %2146 = vmatprep.subr.bf16.mxu1 %v2145_v60 }
 0x15a   :  { %1790 = vmatmul.mubr.f32.vlgmr.msra.gmra.mrb[4].mxu1 %v461_v54 }
 0x15b   :  { %1792 = vmatprep.mubr.f32.mxu1 %v462_v55  ;;  %2148 = vmatpush3.bf16.msra.mxu1 %v2145_v60 }
 0x15c   :  { %2150 = vmatprep.subr.bf16.mxu1 %v2149_v0 }
 0x15e   :  { %1793 = vmatmul.mubr.f32.gmra.mrb[6].mxu1 %v463_v56 }
 0x15f   :  { %2152 = vmatpush3.bf16.msra.mxu1 %v2149_v0 }
 0x160   :  { %2154 = vmatprep.subr.bf16.mxu1 %v2153_v3 }
 0x163   :  { %2156 = vmatpush3.bf16.msra.mxu1 %v2153_v3  ;;  %v571_v3 = vshrl.u32 %v570_v2, 7 }
 0x164   :  { %2158 = vmatprep.subr.bf16.mxu1 %v2157_v7 }
 0x165   :  { %v2809_v6 = vsub.s32 0, %v571_v3 }
 0x167   :  { %2160 = vmatpush3.bf16.msra.mxu1 %v2157_v7 }
 0x168   :  { %2162 = vmatprep.subr.bf16.mxu1 %v2161_v13 }
 0x16b   :  { %2164 = vmatpush3.bf16.msra.mxu1 %v2161_v13 }
 0x16c   :  { %2166 = vmatprep.subr.bf16.mxu1 %v2165_v18 }
 0x16f   :  { %2168 = vmatpush3.bf16.msra.mxu1 %v2165_v18 }
 0x170   :  { %2170 = vmatprep.subr.bf16.mxu1 %v2169_v22 }
 0x173   :  { %2172 = vmatpush3.bf16.msra.mxu1 %v2169_v22 }
 0x174   :  { %2174 = vmatprep.subr.bf16.mxu1 %v2173_v27 }
 0x177   :  { %2176 = vmatpush3.bf16.msra.mxu1 %v2173_v27 }
 0x178   :  { %2178 = vmatprep.subr.bf16.mxu1 %v2803_v31 }
 0x20d   :  { %v1753_v8 = vpop.f32.mrb[0].mxu1 }
 0x20e   :  { %v432_v9 = vpop.f32.mrb[1].mxu1 }
 0x20f   :  { %v451_v12 = vadd.f32 %v1753_v8, %v432_v9  ;;  %v566_v9 = vld [vmem:[%s2975_s4] sm:$0x1] }
 0x211   :  { %v1756_v17 = vpop.f32.mrb[2].mxu1 }
 0x212   :  { %v442_v20 = vpop.f32.mrb[3].mxu1 }
 0x213   :  { %v452_v21 = vadd.f32 %v451_v12, %v442_v20 }
 0x215   :  { %v453_v25 = vadd.f32 %v1756_v17, %v452_v21 }
 0x217   :  { %v454_v33 = vrot.slane %v453_v25, 4 }
 0x219   :  { %v455_v35 = vadd.f32 %v454_v33, %v453_v25 }
 0x21b   :  { %v456_v38 = vrot.slane %v455_v35, 2 }
 0x21d   :  { %v457_v43 = vadd.f32 %v456_v38, %v455_v35 }
 0x21f   :  { %v458_v46 = vrot.slane %v457_v43, 1 }
 0x221   :  { %v459_v54 = vadd.f32 %v458_v46, %v457_v43 }
 0x223   :  { %v558_v58 = vmul.f32 0.001953125, %v459_v54 }
 0x225   :  { %v560_v61 = vmul.f32 %v558_v58, %v558_v58 }
 0x22d   :  { %v1791_v36 = vpop.f32.mrb[4].mxu1 }
 0x22e   :  { %v530_v37 = vpop.f32.mrb[5].mxu1 }
 0x22f   :  { %v549_v40 = vadd.f32 %v1791_v36, %v530_v37 }
 0x231   :  { %v1794_v41 = vpop.f32.mrb[6].mxu1 }
 0x232   :  { %v540_v42 = vpop.f32.mrb[7].mxu1 }
 0x233   :  { %v550_v44 = vadd.f32 %v549_v40, %v540_v42 }
 0x235   :  { %v551_v45 = vadd.f32 %v1794_v41, %v550_v44 }
 0x237   :  { %v552_v47 = vrot.slane %v551_v45, 4 }
 0x239   :  { %v553_v53 = vadd.f32 %v552_v47, %v551_v45 }
 0x23b   :  { %v554_v55 = vrot.slane %v553_v53, 2 }
 0x23d   :  { %v555_v56 = vadd.f32 %v554_v55, %v553_v53 }
 0x23f   :  { %v556_v59 = vrot.slane %v555_v56, 1 }
 0x241   :  { %v557_v60 = vadd.f32 %v556_v59, %v555_v56 }
 0x243   :  { %v559_v62 = vmul.f32 0.001953125, %v557_v60 }
 0x245   :  { %v561_v0 = vsub.f32 %v559_v62, %v560_v61 }
 0x247   :  { %v563_v1 = vadd.f32 1e-05, %v561_v0 }
 0x249   :  { %2322 = vrsqrt.f32 %v563_v1 }
 0x253   :  { %v2323_v7 = vpop.eup %2322 }
 0x254   :  { %v565_v8 = vmul.f32 %v2323_v7, %v562_v4 }
 0x256   :  { %v567_v10 = vmul.f32 %v565_v8, %v558_v58  ;;  %v573_v11 = vrot.slane %v565_v8, %v2809_v6 }
 0x258   :  { %v568_v12 = vsub.f32 %v566_v9, %v567_v10  ;;  %v575_v13 = vmul.f32 %v573_v11, %v2716_v50  ;;  %v576_v14 = vmul.f32 %v2714_v48, %v573_v11  ;;  %v577_v15 = vmul.f32 %v573_v11, %v2723_v52 }
 0x259   :  { %v578_v16 = vmul.f32 %v2721_v51, %v573_v11 }
 0x25a   :  { %v583_v17 = vrot.slane %v568_v12, %v2809_v6 }
 0x25c   :  { %v585_v18 = vadd.f32 %v583_v17, %v575_v13  ;;  %v586_v19 = vadd.f32 %v583_v17, %v576_v14  ;;  %v587_v20 = vadd.f32 %v583_v17, %v577_v15  ;;  %v588_v21 = vadd.f32 %v583_v17, %v578_v16  ;;  %v679_v16 = vld [vmem:[%s2973_s5 + $0x10] sm:$0xff]  ;;  %v680_v17 = vld [vmem:[%s2973_s5 + $0x18] sm:$0xff] }
 0x25e   :  { %v1349_v22 = vadd.f32 -0.5, %v585_v18  ;;  %v1350_v23 = vadd.f32 -0.5, %v586_v19  ;;  %v1351_v24 = vadd.f32 -0.5, %v587_v20  ;;  %v1352_v25 = vadd.f32 -0.5, %v588_v21 }
 0x260   :  { %v1353_v27 = vmul.f32 -1.442695, %v1349_v22  ;;  %v1354_v28 = vmul.f32 -1.442695, %v1350_v23  ;;  %v1355_v30 = vmul.f32 -1.442695, %v1351_v24 }
 0x261   :  { %v1356_v50 = vmul.f32 -1.442695, %v1352_v25 }
 0x262   :  { %2324 = vpow2.f32 %v1353_v27  ;;  %v2181_v27 = vpack.c.bf16 %v680_v17, %v679_v16  ;;  %v1389_v17 = vld [vmem:[%s2973_s5 + $0x160] sm:$0xff] }
 0x263   :  { %2326 = vpow2.f32 %v1354_v28 }
 0x264   :  { %2328 = vpow2.f32 %v1355_v30 }
 0x265   :  { %2330 = vpow2.f32 %v1356_v50 }
 0x26c   :  { %v2325_v48 = vpop.eup %2324 }
 0x26d   :  { %v2327_v51 = vpop.eup %2326  ;;  %v605_v52 = vadd.f32 1.0, %v2325_v48  ;;  %v681_v48 = vld [vmem:[%s2973_s5 + $0x20] sm:$0xff] }
 0x26e   :  { %v2329_v32 = vpop.eup %2328  ;;  %v606_v33 = vadd.f32 1.0, %v2327_v51  ;;  %v682_v51 = vld [vmem:[%s2973_s5 + $0x28] sm:$0xff] }
 0x26f   :  { %v2331_v35 = vpop.eup %2330  ;;  %v607_v36 = vadd.f32 1.0, %v2329_v32  ;;  %2332 = vrcp.f32 %v605_v52  ;;  %v2185_v32 = vpack.c.bf16 %v682_v51, %v681_v48 }
 0x270   :  { %v608_v37 = vadd.f32 1.0, %v2331_v35  ;;  %2334 = vrcp.f32 %v606_v33  ;;  %v683_v33 = vld [vmem:[%s2973_s5 + $0x30] sm:$0xff]  ;;  %v684_v35 = vld [vmem:[%s2973_s5 + $0x38] sm:$0xff] }
 0x271   :  { %2336 = vrcp.f32 %v607_v36 }
 0x272   :  { %2338 = vrcp.f32 %v608_v37  ;;  %v2189_v37 = vpack.c.bf16 %v684_v35, %v683_v33 }
 0x279   :  { %v2333_v38 = vpop.eup %2332 }
 0x27a   :  { %v2335_v40 = vpop.eup %2334  ;;  %v617_v41 = vmul.f32 0.5, %v2333_v38  ;;  %v686_v38 = vld [vmem:[%s2973_s5 + $0x48] sm:$0xff] }
 0x27b   :  { %v2337_v42 = vpop.eup %2336  ;;  %v618_v43 = vmul.f32 0.5, %v2335_v40 }
 0x27c   :  { %v2339_v44 = vpop.eup %2338  ;;  %v619_v45 = vmul.f32 0.5, %v2337_v42  ;;  %v621_v46 = vadd.f32 0.25, %v617_v41  ;;  %v687_v41 = vld [vmem:[%s2973_s5 + $0x50] sm:$0xff]  ;;  %v688_v42 = vld [vmem:[%s2973_s5 + $0x58] sm:$0xff] }
 0x27d   :  { %v620_v47 = vmul.f32 0.5, %v2339_v44  ;;  %v622_v53 = vadd.f32 0.25, %v618_v43  ;;  %v2197_v43 = vpack.c.bf16 %v688_v42, %v687_v41  ;;  %v689_v44 = vld [vmem:[%s2973_s5 + $0x60] sm:$0xff] }
 0x27e   :  { %v623_v54 = vadd.f32 0.25, %v619_v45  ;;  %v629_v55 = vsub.f32 %v585_v18, %v621_v46  ;;  %v625_v14 = vmul.f32 0.5, %v621_v46  ;;  %v690_v45 = vld [vmem:[%s2973_s5 + $0x68] sm:$0xff] }
 0x27f   :  { %v624_v56 = vadd.f32 0.25, %v620_v47  ;;  %v630_v58 = vsub.f32 %v586_v19, %v622_v53  ;;  %v626_v19 = vmul.f32 0.5, %v622_v53  ;;  %v2201_v46 = vpack.c.bf16 %v690_v45, %v689_v44  ;;  %v691_v47 = vld [vmem:[%s2973_s5 + $0x70] sm:$0xff]  ;;  %v692_v53 = vld [vmem:[%s2973_s5 + $0x78] sm:$0xff] }
 0x280   :  { %v631_v59 = vsub.f32 %v587_v20, %v623_v54  ;;  %v1357_v60 = vmul.f32 -1.442695, %v629_v55  ;;  %v627_v23 = vmul.f32 0.5, %v623_v54  ;;  %v2205_v54 = vpack.c.bf16 %v692_v53, %v691_v47  ;;  %v1377_v55 = vld [vmem:[%s2973_s5 + $0x100] sm:$0xff] }
 0x281   :  { %v632_v61 = vsub.f32 %v588_v21, %v624_v56  ;;  %v1358_v62 = vmul.f32 -1.442695, %v630_v58  ;;  %v628_v28 = vmul.f32 0.5, %v624_v56  ;;  %v1378_v56 = vld [vmem:[%s2973_s5 + $0x108] sm:$0xff] }
 0x282   :  { %2340 = vpow2.f32 %v1357_v60  ;;  %v1359_v0 = vmul.f32 -1.442695, %v631_v59  ;;  %v2209_v58 = vpack.c.bf16 %v1378_v56, %v1377_v55  ;;  %v1379_v59 = vld [vmem:[%s2973_s5 + $0x110] sm:$0xff]  ;;  %v1380_v60 = vld [vmem:[%s2973_s5 + $0x118] sm:$0xff] }
 0x283   :  { %2342 = vpow2.f32 %v1358_v62  ;;  %v1360_v1 = vmul.f32 -1.442695, %v632_v61  ;;  %v2213_v61 = vpack.c.bf16 %v1380_v60, %v1379_v59 }
 0x284   :  { %2344 = vpow2.f32 %v1359_v0  ;;  %v1381_v0 = vld [vmem:[%s2973_s5 + $0x120] sm:$0xff] }
 0x285   :  { %2346 = vpow2.f32 %v1360_v1  ;;  %v1382_v1 = vld [vmem:[%s2973_s5 + $0x128] sm:$0xff] }
 0x28c   :  { %v2341_v2 = vpop.eup %2340 }
 0x28d   :  { %v2343_v3 = vpop.eup %2342  ;;  %v645_v4 = vadd.f32 1.0, %v2341_v2 }
 0x28e   :  { %v2345_v7 = vpop.eup %2344  ;;  %v646_v8 = vadd.f32 1.0, %v2343_v3  ;;  %v2217_v3 = vpack.c.bf16 %v1382_v1, %v1381_v0  ;;  %v1206_v0 = vld [vmem:[%s2976_s6] sm:$0x1] }
 0x28f   :  { %v2347_v9 = vpop.eup %2346  ;;  %2348 = vrcp.f32 %v645_v4  ;;  %v647_v10 = vadd.f32 1.0, %v2345_v7  ;;  %v1383_v7 = vld [vmem:[%s2973_s5 + $0x130] sm:$0xff] }
 0x290   :  { %2350 = vrcp.f32 %v646_v8  ;;  %v648_v11 = vadd.f32 1.0, %v2347_v9  ;;  %v1384_v8 = vld [vmem:[%s2973_s5 + $0x138] sm:$0xff] }
 0x291   :  { %2352 = vrcp.f32 %v647_v10  ;;  %v2221_v10 = vpack.c.bf16 %v1384_v8, %v1383_v7 }
 0x292   :  { %2354 = vrcp.f32 %v648_v11  ;;  %v1385_v11 = vld [vmem:[%s2973_s5 + $0x140] sm:$0xff] }
 0x299   :  { %v2349_v12 = vpop.eup %2348 }
 0x29a   :  { %v2351_v13 = vpop.eup %2350  ;;  %v657_v15 = vmul.f32 0.5, %v2349_v12  ;;  %v1386_v12 = vld [vmem:[%s2973_s5 + $0x148] sm:$0xff] }
 0x29b   :  { %v2353_v18 = vpop.eup %2352  ;;  %v658_v20 = vmul.f32 0.5, %v2351_v13  ;;  %v2225_v13 = vpack.c.bf16 %v1386_v12, %v1385_v11 }
 0x29c   :  { %v2355_v21 = vpop.eup %2354  ;;  %v661_v22 = vadd.f32 %v657_v15, %v625_v14  ;;  %v659_v24 = vmul.f32 0.5, %v2353_v18  ;;  %v1387_v14 = vld [vmem:[%s2973_s5 + $0x150] sm:$0xff]  ;;  %v1388_v15 = vld [vmem:[%s2973_s5 + $0x158] sm:$0xff]  ;;  %v1390_v18 = vld [vmem:[%s2973_s5 + $0x168] sm:$0xff] }
 0x29d   :  { %v662_v25 = vadd.f32 %v658_v20, %v626_v19  ;;  %v660_v30 = vmul.f32 0.5, %v2355_v21  ;;  %v2229_v16 = vpack.c.bf16 %v1388_v15, %v1387_v14  ;;  %v2233_v19 = vpack.c.bf16 %v1390_v18, %v1389_v17  ;;  %v1391_v20 = vld [vmem:[%s2973_s5 + $0x170] sm:$0xff]  ;;  %v1392_v21 = vld [vmem:[%s2973_s5 + $0x178] sm:$0xff] }
 0x29e   :  { %669 = vst [vmem:[#allocation2 + $0x1] sm:$0xff] %v661_v22  ;;  %1827 = vmatprep.mubr.f32.mxu1 %v661_v22  ;;  %v663_v50 = vadd.f32 %v659_v24, %v627_v23  ;;  %v2237_v22 = vpack.c.bf16 %v1392_v21, %v1391_v20 }
 0x29f   :  { %670 = vst [vmem:[#allocation2 + $0x9] sm:$0xff] %v662_v25  ;;  %1828 = vmatmul.mubr.f32.vlgmr.msra.gmra.mrb[8].mxu1 %v662_v25  ;;  %v664_v52 = vadd.f32 %v660_v30, %v628_v28 }
 0x2a0   :  { %2180 = vmatpush3.bf16.msra.mxu1 %v2803_v31  ;;  %671 = vst [vmem:[#allocation2 + $0x19] sm:$0xff] %v663_v50  ;;  %1830 = vmatprep.mubr.f32.mxu1 %v663_v50  ;;  %v685_v31 = vld [vmem:[%s2973_s5 + $0x40] sm:$0xff] }
 0x2a1   :  { %2182 = vmatprep.subr.bf16.mxu1 %v2181_v27  ;;  %672 = vst [vmem:[#allocation2 + $0x21] sm:$0xff] %v664_v52  ;;  %v2193_v40 = vpack.c.bf16 %v686_v38, %v685_v31 }
 0x2a3   :  { %1831 = vmatmul.mubr.f32.gmra.mrb[10].mxu1 %v664_v52 }
 0x2a4   :  { %2184 = vmatpush3.bf16.msra.mxu1 %v2181_v27 }
 0x2a5   :  { %v673_v36 = vld [vmem:[#allocation2] sm:$0xff]  ;;  %2186 = vmatprep.subr.bf16.mxu1 %v2185_v32 }
 0x2a6   :  { %1865 = vmatprep.mubr.f32.mxu1 %v673_v36  ;;  %v674_v62 = vld [vmem:[#allocation2 + $0x8] sm:$0xff] }
 0x2a7   :  { %v675_v2 = vld [vmem:[#allocation2 + $0x18] sm:$0xff]  ;;  %v884_v9 = vld [vmem:[#allocation2 + $0x2] sm:$0xff]  ;;  %v885_v23 = vld [vmem:[#allocation2 + $0xa] sm:$0xff] }
 0x2a8   :  { %2188 = vmatpush3.bf16.msra.mxu1 %v2185_v32  ;;  %v676_v4 = vld [vmem:[#allocation2 + $0x20] sm:$0xff] }
 0x2a9   :  { %2190 = vmatprep.subr.bf16.mxu1 %v2189_v37  ;;  %v886_v24 = vld [vmem:[#allocation2 + $0x1a] sm:$0xff]  ;;  %v887_v25 = vld [vmem:[#allocation2 + $0x22] sm:$0xff] }
 0x2ac   :  { %2192 = vmatpush3.bf16.msra.mxu1 %v2189_v37 }
 0x2ad   :  { %2194 = vmatprep.subr.bf16.mxu1 %v2193_v40 }
 0x2b0   :  { %2196 = vmatpush3.bf16.msra.mxu1 %v2193_v40 }
 0x2b1   :  { %2198 = vmatprep.subr.bf16.mxu1 %v2197_v43 }
 0x2b4   :  { %2200 = vmatpush3.bf16.msra.mxu1 %v2197_v43 }
 0x2b5   :  { %2202 = vmatprep.subr.bf16.mxu1 %v2201_v46 }
 0x2b8   :  { %2204 = vmatpush3.bf16.msra.mxu1 %v2201_v46 }
 0x2b9   :  { %2206 = vmatprep.subr.bf16.mxu1 %v2205_v54 }
 0x2bc   :  { %2208 = vmatpush3.bf16.msra.mxu1 %v2205_v54 }
 0x2bd   :  { %2210 = vmatprep.subr.bf16.mxu1 %v2209_v58 }
 0x2bf   :  { %1866 = vmatmul.mubr.f32.vlgmr.msra.gmra.mrb[8].mxu1 %v674_v62 }
 0x2c0   :  { %1868 = vmatprep.mubr.f32.mxu1 %v675_v2  ;;  %2212 = vmatpush3.bf16.msra.mxu1 %v2209_v58 }
 0x2c1   :  { %2214 = vmatprep.subr.bf16.mxu1 %v2213_v61 }
 0x2c3   :  { %1869 = vmatmul.mubr.f32.gmra.mrb[10].mxu1 %v676_v4 }
 0x2c4   :  { %2216 = vmatpush3.bf16.msra.mxu1 %v2213_v61  ;;  %1903 = vmatprep.mubr.f32.mxu1 %v884_v9 }
 0x2c5   :  { %2218 = vmatprep.subr.bf16.mxu1 %v2217_v3 }
 0x2c8   :  { %2220 = vmatpush3.bf16.msra.mxu1 %v2217_v3  ;;  %v1210_v3 = vld [vmem:[%s2977_s7] sm:$0x1] }
 0x2c9   :  { %2222 = vmatprep.subr.bf16.mxu1 %v2221_v10 }
 0x2cc   :  { %2224 = vmatpush3.bf16.msra.mxu1 %v2221_v10 }
 0x2cd   :  { %2226 = vmatprep.subr.bf16.mxu1 %v2225_v13 }
 0x2d0   :  { %2228 = vmatpush3.bf16.msra.mxu1 %v2225_v13 }
 0x2d1   :  { %2230 = vmatprep.subr.bf16.mxu1 %v2229_v16 }
 0x2d4   :  { %2232 = vmatpush3.bf16.msra.mxu1 %v2229_v16 }
 0x2d5   :  { %2234 = vmatprep.subr.bf16.mxu1 %v2233_v19 }
 0x2d8   :  { %2236 = vmatpush3.bf16.msra.mxu1 %v2233_v19 }
 0x2d9   :  { %2238 = vmatprep.subr.bf16.mxu1 %v2237_v22 }
 0x2dc   :  { %2240 = vmatpush3.bf16.msra.mxu1 %v2237_v22 }
 0x2df   :  { %1904 = vmatmul.mubr.f32.vlgmr.msra.gmra.mrb[8].mxu1 %v885_v23 }
 0x2e0   :  { %1906 = vmatprep.mubr.f32.mxu1 %v886_v24 }
 0x2e3   :  { %1907 = vmatmul.mubr.f32.gmra.mrb[10].mxu1 %v887_v25 }
 0x3b2   :  { %v2911_v27 = vpop.f32.mrb[8].mxu1 }
 0x3b3   :  { %v2913_v28 = vpop.f32.mrb[9].mxu1 }
 0x3b4   :  { %1941 = vmatprep.mubr.f32.mxu0 %v2913_v28  ;;  %v1104_v48 = vmul.f32 %v2913_v28, %v2913_v28 }
 0x3b5   :  { %1942 = vmatmul.mubr.f32.vlgmr.msra.gmra.mrb[4].mxu0 %v2911_v27 }
 0x3b6   :  { %2276 = vmatpush3.bf16.msra.mxu0 %v2493_v26  ;;  %v2918_v30 = vpop.f32.mrb[10].mxu1  ;;  %v1105_v26 = vmul.f32 %v2911_v27, %v2911_v27 }
 0x3b7   :  { %v2920_v50 = vpop.f32.mrb[11].mxu1  ;;  %2278 = vmatprep.subr.bf16.mxu0 %v2501_v29 }
 0x3b8   :  { %1944 = vmatprep.mubr.f32.mxu0 %v2920_v50 }
 0x3b9   :  { %1945 = vmatmul.mubr.f32.gmra.mrb[6].mxu0 %v2918_v30 }
 0x3ba   :  { %2280 = vmatpush3.bf16.msra.mxu0 %v2501_v29  ;;  %1979 = vmatprep.mubr.f32.mxu0 %v1104_v48  ;;  %v1106_v29 = vmul.f32 %v2920_v50, %v2920_v50 }
 0x3bb   :  { %2282 = vmatprep.subr.bf16.mxu0 %v2515_v34 }
 0x3be   :  { %2284 = vmatpush3.bf16.msra.mxu0 %v2515_v34  ;;  %v1107_v34 = vmul.f32 %v2918_v30, %v2918_v30 }
 0x3bf   :  { %2286 = vmatprep.subr.bf16.mxu0 %v2528_v39 }
 0x3c2   :  { %2288 = vmatpush3.bf16.msra.mxu0 %v2528_v39 }
 0x3c3   :  { %2290 = vmatprep.subr.bf16.mxu0 %v2556_v49 }
 0x3c6   :  { %2292 = vmatpush3.bf16.msra.mxu0 %v2556_v49 }
 0x3c7   :  { %2294 = vmatprep.subr.bf16.mxu0 %v2578_v57 }
 0x3ca   :  { %2296 = vmatpush3.bf16.msra.mxu0 %v2578_v57 }
 0x3cb   :  { %2298 = vmatprep.subr.bf16.mxu0 %v2594_v63 }
 0x3ce   :  { %2300 = vmatpush3.bf16.msra.mxu0 %v2594_v63 }
 0x3cf   :  { %2302 = vmatprep.subr.bf16.mxu0 %v2610_v5 }
 0x3d2   :  { %2304 = vmatpush3.bf16.msra.mxu0 %v2610_v5 }
 0x3d5   :  { %1980 = vmatmul.mubr.f32.vlgmr.msra.gmra.mrb[8].mxu0 %v1105_v26 }
 0x3d6   :  { %1982 = vmatprep.mubr.f32.mxu0 %v1106_v29 }
 0x3d9   :  { %1983 = vmatmul.mubr.f32.gmra.mrb[10].mxu0 %v1107_v34 }
 0x488   :  { %v1943_v39 = vpop.f32.mrb[4].mxu0 }
 0x489   :  { %v1076_v49 = vpop.f32.mrb[5].mxu0 }
 0x48a   :  { %v1095_v57 = vadd.f32 %v1943_v39, %v1076_v49 }
 0x48c   :  { %v1946_v63 = vpop.f32.mrb[6].mxu0 }
 0x48d   :  { %v1086_v51 = vpop.f32.mrb[7].mxu0 }
 0x48e   :  { %v1096_v52 = vadd.f32 %v1095_v57, %v1086_v51 }
 0x490   :  { %v1097_v32 = vadd.f32 %v1946_v63, %v1096_v52 }
 0x492   :  { %v1098_v5 = vrot.slane %v1097_v32, 4 }
 0x494   :  { %v1099_v33 = vadd.f32 %v1098_v5, %v1097_v32 }
 0x496   :  { %v1100_v37 = vrot.slane %v1099_v33, 2 }
 0x498   :  { %v1101_v41 = vadd.f32 %v1100_v37, %v1099_v33 }
 0x49a   :  { %v1102_v44 = vrot.slane %v1101_v41, 1 }
 0x49c   :  { %v1103_v47 = vadd.f32 %v1102_v44, %v1101_v41 }
 0x49e   :  { %v1202_v55 = vmul.f32 0.001953125, %v1103_v47 }
 0x4a0   :  { %v1204_v59 = vmul.f32 %v1202_v55, %v1202_v55 }
 0x4a8   :  { %v1981_v35 = vpop.f32.mrb[8].mxu0 }
 0x4a9   :  { %v1174_v36 = vpop.f32.mrb[9].mxu0 }
 0x4aa   :  { %v1193_v31 = vadd.f32 %v1981_v35, %v1174_v36 }
 0x4ac   :  { %v1984_v38 = vpop.f32.mrb[10].mxu0 }
 0x4ad   :  { %v1184_v40 = vpop.f32.mrb[11].mxu0 }
 0x4ae   :  { %v1194_v42 = vadd.f32 %v1193_v31, %v1184_v40 }
 0x4b0   :  { %v1195_v43 = vadd.f32 %v1984_v38, %v1194_v42 }
 0x4b2   :  { %v1196_v45 = vrot.slane %v1195_v43, 4 }
 0x4b4   :  { %v1197_v46 = vadd.f32 %v1196_v45, %v1195_v43 }
 0x4b6   :  { %v1198_v53 = vrot.slane %v1197_v46, 2 }
 0x4b8   :  { %v1199_v54 = vadd.f32 %v1198_v53, %v1197_v46 }
 0x4ba   :  { %v1200_v56 = vrot.slane %v1199_v54, 1 }
 0x4bc   :  { %v1201_v58 = vadd.f32 %v1200_v56, %v1199_v54 }
 0x4be   :  { %v1203_v60 = vmul.f32 0.001953125, %v1201_v58 }
 0x4c0   :  { %v1205_v61 = vsub.f32 %v1203_v60, %v1204_v59 }
 0x4c2   :  { %v1207_v62 = vadd.f32 1e-05, %v1205_v61 }
 0x4c4   :  { %2356 = vrsqrt.f32 %v1207_v62 }
 0x4ce   :  { %v2357_v1 = vpop.eup %2356 }
 0x4cf   :  { %v1209_v2 = vmul.f32 %v2357_v1, %v1206_v0 }
 0x4d1   :  { %v1211_v4 = vmul.f32 %v1209_v2, %v1202_v55  ;;  %v1217_v7 = vrot.slane %v1209_v2, %v2809_v6 }
 0x4d3   :  { %v1212_v8 = vsub.f32 %v1210_v3, %v1211_v4  ;;  %v1219_v9 = vmul.f32 %v1217_v7, %v2913_v28  ;;  %v1220_v10 = vmul.f32 %v2911_v27, %v1217_v7  ;;  %v1221_v11 = vmul.f32 %v1217_v7, %v2920_v50 }
 0x4d4   :  { %v1222_v12 = vmul.f32 %v2918_v30, %v1217_v7 }
 0x4d5   :  { %v1227_v13 = vrot.slane %v1212_v8, %v2809_v6 }
 0x4d7   :  { %v1229_v14 = vadd.f32 %v1227_v13, %v1219_v9  ;;  %v1230_v15 = vadd.f32 %v1227_v13, %v1220_v10  ;;  %v1231_v16 = vadd.f32 %v1227_v13, %v1221_v11  ;;  %v1232_v17 = vadd.f32 %v1227_v13, %v1222_v12 }
 0x4d9   :  { %v1393_v18 = vadd.f32 -0.5, %v1229_v14  ;;  %v1394_v19 = vadd.f32 -0.5, %v1230_v15  ;;  %v1395_v20 = vadd.f32 -0.5, %v1231_v16  ;;  %v1396_v21 = vadd.f32 -0.5, %v1232_v17 }
 0x4db   :  { %v1397_v22 = vmul.f32 -1.442695, %v1393_v18  ;;  %v1398_v23 = vmul.f32 -1.442695, %v1394_v19  ;;  %v1399_v24 = vmul.f32 -1.442695, %v1395_v20 }
 0x4dc   :  { %v1400_v25 = vmul.f32 -1.442695, %v1396_v21 }
 0x4dd   :  { %2358 = vpow2.f32 %v1397_v22 }
 0x4de   :  { %2360 = vpow2.f32 %v1398_v23 }
 0x4df   :  { %2362 = vpow2.f32 %v1399_v24 }
 0x4e0   :  { %2364 = vpow2.f32 %v1400_v25 }
 0x4e7   :  { %v2359_v27 = vpop.eup %2358 }
 0x4e8   :  { %v2361_v28 = vpop.eup %2360  ;;  %v1249_v30 = vadd.f32 1.0, %v2359_v27 }
 0x4e9   :  { %v2363_v6 = vpop.eup %2362  ;;  %v1250_v50 = vadd.f32 1.0, %v2361_v28 }
 0x4ea   :  { %v2365_v48 = vpop.eup %2364  ;;  %v1251_v26 = vadd.f32 1.0, %v2363_v6  ;;  %2366 = vrcp.f32 %v1249_v30 }
 0x4eb   :  { %v1252_v29 = vadd.f32 1.0, %v2365_v48  ;;  %2368 = vrcp.f32 %v1250_v50 }
 0x4ec   :  { %2370 = vrcp.f32 %v1251_v26 }
 0x4ed   :  { %2372 = vrcp.f32 %v1252_v29 }
 0x4f4   :  { %v2367_v34 = vpop.eup %2366 }
 0x4f5   :  { %v2369_v39 = vpop.eup %2368  ;;  %v1261_v49 = vmul.f32 0.5, %v2367_v34 }
 0x4f6   :  { %v2371_v57 = vpop.eup %2370  ;;  %v1262_v63 = vmul.f32 0.5, %v2369_v39 }
 0x4f7   :  { %v2373_v51 = vpop.eup %2372  ;;  %v1263_v52 = vmul.f32 0.5, %v2371_v57  ;;  %v1265_v32 = vadd.f32 0.25, %v1261_v49 }
 0x4f8   :  { %v1264_v5 = vmul.f32 0.5, %v2373_v51  ;;  %v1266_v33 = vadd.f32 0.25, %v1262_v63 }
 0x4f9   :  { %v1267_v35 = vadd.f32 0.25, %v1263_v52  ;;  %v1273_v36 = vsub.f32 %v1229_v14, %v1265_v32  ;;  %v1269_v61 = vmul.f32 0.5, %v1265_v32 }
 0x4fa   :  { %v1268_v37 = vadd.f32 0.25, %v1264_v5  ;;  %v1274_v31 = vsub.f32 %v1230_v15, %v1266_v33  ;;  %v1270_v1 = vmul.f32 0.5, %v1266_v33 }
 0x4fb   :  { %v1275_v38 = vsub.f32 %v1231_v16, %v1267_v35  ;;  %v1401_v40 = vmul.f32 -1.442695, %v1273_v36  ;;  %v1271_v4 = vmul.f32 0.5, %v1267_v35 }
 0x4fc   :  { %v1276_v41 = vsub.f32 %v1232_v17, %v1268_v37  ;;  %v1402_v42 = vmul.f32 -1.442695, %v1274_v31  ;;  %v1272_v9 = vmul.f32 0.5, %v1268_v37 }
 0x4fd   :  { %2374 = vpow2.f32 %v1401_v40  ;;  %v1403_v43 = vmul.f32 -1.442695, %v1275_v38 }
 0x4fe   :  { %2376 = vpow2.f32 %v1402_v42  ;;  %v1404_v44 = vmul.f32 -1.442695, %v1276_v41 }
 0x4ff   :  { %2378 = vpow2.f32 %v1403_v43 }
 0x500   :  { %2380 = vpow2.f32 %v1404_v44 }
 0x507   :  { %v2375_v45 = vpop.eup %2374 }
 0x508   :  { %v2377_v46 = vpop.eup %2376  ;;  %v1289_v47 = vadd.f32 1.0, %v2375_v45 }
 0x509   :  { %v2379_v53 = vpop.eup %2378  ;;  %v1290_v54 = vadd.f32 1.0, %v2377_v46 }
 0x50a   :  { %v2381_v55 = vpop.eup %2380  ;;  %v1291_v56 = vadd.f32 1.0, %v2379_v53  ;;  %2382 = vrcp.f32 %v1289_v47 }
 0x50b   :  { %v1292_v58 = vadd.f32 1.0, %v2381_v55  ;;  %2384 = vrcp.f32 %v1290_v54 }
 0x50c   :  { %2386 = vrcp.f32 %v1291_v56 }
 0x50d   :  { %2388 = vrcp.f32 %v1292_v58 }
 0x514   :  { %v2383_v59 = vpop.eup %2382 }
 0x515   :  { %v2385_v60 = vpop.eup %2384  ;;  %v1301_v62 = vmul.f32 0.5, %v2383_v59 }
 0x516   :  { %v2387_v0 = vpop.eup %2386  ;;  %v1302_v2 = vmul.f32 0.5, %v2385_v60 }
 0x517   :  { %v2389_v3 = vpop.eup %2388  ;;  %v1303_v7 = vmul.f32 0.5, %v2387_v0  ;;  %v1305_v8 = vadd.f32 %v1301_v62, %v1269_v61 }
 0x518   :  { %v1304_v10 = vmul.f32 0.5, %v2389_v3  ;;  %v1306_v11 = vadd.f32 %v1302_v2, %v1270_v1 }
 0x519   :  { %v1307_v12 = vadd.f32 %v1303_v7, %v1271_v4  ;;  %1309 = vst [vmem:[%s2978_s8] sm:$0xff] %v1305_v8 }
 0x51a   :  { %v1308_v13 = vadd.f32 %v1304_v10, %v1272_v9  ;;  %1310 = vst [vmem:[%s2978_s8 + $0x8] sm:$0xff] %v1306_v11 }
 0x51b   :  { %1311 = vst [vmem:[%s2978_s8 + $0x10] sm:$0xff] %v1307_v12 }
 0x51c   :  { %1312 = vst [vmem:[%s2978_s8 + $0x18] sm:$0xff] %v1308_v13 }

</bundles_post_ra>
